<compile_context>
chip_gen: v5e
topology: v5e:2x2
jax: 0.10.0
libtpu: 0.0.40
codegen_flags: <defaults>
</compile_context>

<pallas_src>
import functools

import jax
import jax.numpy as jnp
from jax import lax
from jax.experimental import pallas as pl
from jax.experimental.pallas import tpu as pltpu

LANE = 128


# ------------------------------ small helpers ---------------------------------

def _round_up(x, m):
    return (x + m - 1) // m * m


def _cdiv(a, b):
    return (a + b - 1) // b


def _pad_dim(a, axis, target):
    pad = target - a.shape[axis]
    if pad == 0:
        return a
    cfg = [(0, 0)] * a.ndim
    cfg[axis] = (0, pad)
    return jnp.pad(a, cfg)


def _bn_fold(gamma, beta, mean, var, eps=1e-5):
    scale = gamma / jnp.sqrt(var + eps)
    return scale, beta - mean * scale


def _vmem_limit_bytes():
    # v7x: 64 MiB physical VMEM per core; v5e/v6e: 128 MiB.  Leave headroom.
    try:
        cap = int(pltpu.get_tpu_info().vmem_capacity_bytes)
        return min((cap * 3) // 4, 96 * 1024 * 1024)
    except Exception:
        return 48 * 1024 * 1024


# ------------------------------ fused Pallas kernel ----------------------------

def _resblock_kernel(*refs, r, wp, cout, nph, proj, dy_phase, dy_off):
    """One (row-tile, batch) block of the full residual block.

    refs = taps[0..nph-1], w1, b1, mask, w2, b2, xs, [ws], out
      taps[p] : ((r+4)*wp, 3*Cin) bf16   horizontal-im2col'd input rows (phase p)
      w1      : (3, 3*Cin, Cout)  bf16   conv1 weights (BN1 folded), one slice per dy
      b1      : (1, Cout)         f32
      mask    : ((r+2)*wp, 1)     f32    1 inside the image, 0 on pad cols / border rows
      w2      : (3, 3*Cout, Cp)   bf16   conv2 weights (BN2 folded)
      b2      : (1, Cp)           f32    conv2 bias (+ shortcut BN shift if proj)
      xs      : (r*wp, Cs)        bf16   shortcut input (strided x for proj, x for identity)
      ws      : (Cs, Cp)          bf16   1x1-conv shortcut weights (proj only)
      out     : (r*wp, Cp)
    """
    taps = refs[:nph]
    w1_ref, b1_ref, mask_ref, w2_ref, b2_ref, xs_ref = refs[nph:nph + 6]
    if proj:
        ws_ref = refs[nph + 6]
        out_ref = refs[nph + 7]
    else:
        out_ref = refs[nph + 6]

    slab_h = (r + 2) * wp        # conv1 rows incl. the conv2 halo, flattened with row pitch wp
    m = r * wp                   # conv2 output rows of this tile, flattened

    # ---- conv1 + BN1 + ReLU: 3 MXU matmuls (one per vertical tap), K = 3*Cin ----
    h = None
    for dy in range(3):
        lhs = taps[dy_phase[dy]][pl.ds(dy_off[dy] * wp, slab_h), :]
        part = jnp.dot(lhs, w1_ref[dy], preferred_element_type=jnp.float32)
        h = part if h is None else h + part
    # mask zeroes (a) pad columns >= Wo (so the flat +-1 shift wraps into zeros) and
    # (b) conv1 rows outside [0, Ho) (conv2's zero padding at the image border).
    h = (jnp.maximum(h + b1_ref[...], 0.0) * mask_ref[...]).astype(jnp.bfloat16)

    # ---- conv2 horizontal taps from the VMEM-resident slab via flat +-1 shifts ----
    zpad = jnp.zeros((8, cout), jnp.bfloat16)
    hp = jnp.concatenate([zpad, h, zpad], axis=0)          # (slab_h + 16, Cout)
    hh = jnp.concatenate([hp[7:7 + slab_h, :],             # dx = -1
                          hp[8:8 + slab_h, :],             # dx =  0
                          hp[9:9 + slab_h, :]], axis=-1)   # dx = +1  -> (slab_h, 3*Cout)

    # ---- conv2 + BN2 (+ shortcut) + ReLU: 3 MXU matmuls, K = 3*Cout ----
    acc = None
    for dy in range(3):
        part = jnp.dot(hh[dy * wp:dy * wp + m, :], w2_ref[dy],
                       preferred_element_type=jnp.float32)
        acc = part if acc is None else acc + part
    acc = acc + b2_ref[...]

    if proj:
        acc = acc + jnp.dot(xs_ref[...], ws_ref[...], preferred_element_type=jnp.float32)
    else:
        res = xs_ref[...].astype(jnp.float32)
        cp = out_ref.shape[-1]
        if res.shape[-1] < cp:
            res = jnp.concatenate(
                [res, jnp.zeros((m, cp - res.shape[-1]), jnp.float32)], axis=-1)
        acc = acc + res

    out_ref[...] = jnp.maximum(acc, 0.0).astype(out_ref.dtype)


# --------------------------------- JAX glue ------------------------------------

def residual_block_forward(x_nchw, params, stride, *, row_tile=None):
    s = int(stride)
    proj = "ws" in params
    x = jnp.transpose(x_nchw, (0, 2, 3, 1)).astype(jnp.float32)     # NCHW -> NHWC
    N, H, W, Cin = x.shape
    Cout = params["w1"].shape[0]
    assert proj or (s == 1 and Cin == Cout), \
        "identity shortcut requires stride == 1 and Cin == Cout"

    Ho = (H - 1) // s + 1
    Wo = (W - 1) // s + 1
    Cp = _round_up(Cout, LANE)           # lane-dense output channels
    Wp = _round_up(Wo + 1, 8)            # row pitch: >= Wo+1 so +-1 shifts wrap into zero cols

    # Balanced row tiles of the conv2 output -> minimal padded rows.
    target = row_tile if row_tile is not None else max(8, 4096 // Wp)
    T = max(1, _cdiv(Ho, min(target, Ho)))
    R = _cdiv(Ho, T)
    Ho_p = T * R

    x_bf = x.astype(jnp.bfloat16)        # cast before tap gathering (halves glue traffic)

    # ---- conv1 taps: horizontal-only im2col (K = 3*Cin); vertical taps stay in-kernel ----
    xc = jnp.pad(x_bf, ((0, 0), (0, 0), (1, 1), (0, 0)))
    cols = [xc[:, :, dx:dx + s * (Wo - 1) + 1:s, :] for dx in range(3)]
    xcol = jnp.concatenate(cols, axis=-1)                    # (N, H, Wo, 3*Cin)
    xcol = _pad_dim(xcol, 2, Wp)                             # zero pad columns -> Wp

    p_top = s + 1
    a_rows = s * (Ho_p + 4)
    p_bot = a_rows - p_top - H
    A = jnp.pad(xcol, ((0, 0), (p_top, p_bot), (0, 0), (0, 0)))   # (N, a_rows, Wp, 3*Cin)

    if s == 1:
        phases = [A]
        dy_phase, dy_off = (0, 0, 0), (0, 1, 2)
    else:                                    # stride 2: even/odd input-row phases
        phases = [A[:, 0::2], A[:, 1::2]]
        dy_phase, dy_off = (0, 1, 0), (0, 0, 1)

    slab1 = (R + 4) * Wp
    slab_h = (R + 2) * Wp
    m = R * Wp

    tap_inputs = []
    for ph in phases:
        slabs = [ph[:, t * R:t * R + R + 4] for t in range(T)]     # halo-overlapping windows
        tap = jnp.stack(slabs, axis=1).reshape(N, T, slab1, 3 * Cin)
        tap_inputs.append(tap)

    # ---- validity mask over the conv1 slab (pad columns & out-of-image halo rows) ----
    l_idx = jnp.arange(R + 2)[None, :, None]
    t_idx = jnp.arange(T)[:, None, None]
    j = t_idx * R - 1 + l_idx                                   # conv1 row of each slab row
    row_ok = (j >= 0) & (j < Ho)
    col_ok = (jnp.arange(Wp) < Wo)[None, None, :]
    mask = (row_ok & col_ok).astype(jnp.float32).reshape(T, slab_h, 1)

    # ---- BN-folded weights / biases ----
    sc1, sh1 = _bn_fold(params["bn1_gamma"], params["bn1_beta"],
                        params["bn1_mean"], params["bn1_var"])
    w1 = (jnp.transpose(params["w1"], (2, 3, 1, 0)).reshape(3, 3 * Cin, Cout)
          * sc1).astype(jnp.bfloat16)
    b1 = (sh1 + params["b1"] * sc1).reshape(1, Cout)

    sc2, sh2 = _bn_fold(params["bn2_gamma"], params["bn2_beta"],
                        params["bn2_mean"], params["bn2_var"])
    w2 = jnp.transpose(params["w2"], (2, 3, 1, 0)).reshape(3, 3 * Cout, Cout) * sc2
    w2 = _pad_dim(w2, 2, Cp).astype(jnp.bfloat16)          # pad only the *output* channels
    b2 = sh2 + params["b2"] * sc2

    # ---- shortcut (strided x for projection, x itself for identity) ----
    x_sub = x_bf[:, ::s, ::s, :]                           # (N, Ho, Wo, Cin)
    x_sub = _pad_dim(_pad_dim(x_sub, 1, Ho_p), 2, Wp)
    xs = x_sub.reshape(N, T, m, Cin)
    if proj:
        scs, shs = _bn_fold(params["bns_gamma"], params["bns_beta"],
                            params["bns_mean"], params["bns_var"])
        ws = _pad_dim(params["ws"][:, :, 0, 0].T * scs, 1, Cp).astype(jnp.bfloat16)
        b2 = b2 + shs                                      # fold shortcut BN shift into b2
    b2 = _pad_dim(b2.reshape(1, Cout), 1, Cp)

    # ---- one fused pallas_call over (row-tile, batch) ----
    kernel = functools.partial(_resblock_kernel, r=R, wp=Wp, cout=Cout,
                               nph=len(tap_inputs), proj=proj,
                               dy_phase=dy_phase, dy_off=dy_off)

    in_specs = [pl.BlockSpec((None, None, slab1, 3 * Cin), lambda t, n: (n, t, 0, 0))
                for _ in tap_inputs]
    args = list(tap_inputs)
    in_specs += [
        pl.BlockSpec((3, 3 * Cin, Cout), lambda t, n: (0, 0, 0)),
        pl.BlockSpec((1, Cout), lambda t, n: (0, 0)),
        pl.BlockSpec((None, slab_h, 1), lambda t, n: (t, 0, 0)),
        pl.BlockSpec((3, 3 * Cout, Cp), lambda t, n: (0, 0, 0)),
        pl.BlockSpec((1, Cp), lambda t, n: (0, 0)),
        pl.BlockSpec((None, None, m, Cin), lambda t, n: (n, t, 0, 0)),
    ]
    args += [w1, b1, mask, w2, b2, xs]
    if proj:
        in_specs.append(pl.BlockSpec((Cin, Cp), lambda t, n: (0, 0)))
        args.append(ws)

    out = pl.pallas_call(
        kernel,
        out_shape=jax.ShapeDtypeStruct((N, T, m, Cp), jnp.float32),
        grid=(T, N),
        in_specs=in_specs,
        out_specs=pl.BlockSpec((None, None, m, Cp), lambda t, n: (n, t, 0, 0)),
        compiler_params=pltpu.CompilerParams(
            dimension_semantics=("parallel", "parallel"),
            vmem_limit_bytes=_vmem_limit_bytes(),
        ),
    )(*args)

    out = out.reshape(N, Ho_p, Wp, Cp)[:, :Ho, :Wo, :Cout]
    return jnp.transpose(out, (0, 3, 1, 2))                 # NHWC -> NCHW


# ------------------------ deterministic parameter init -------------------------

def init_params(key, cin, cout, stride):
    ks = jax.random.split(key, 17)
    p = {
        "w1": 0.1 * jax.random.normal(ks[0], (cout, cin, 3, 3), jnp.float32),
        "b1": 0.1 * jax.random.normal(ks[1], (cout,), jnp.float32),
        "bn1_gamma": 1.0 + 0.1 * jax.random.normal(ks[2], (cout,), jnp.float32),
        "bn1_beta": 0.1 * jax.random.normal(ks[3], (cout,), jnp.float32),
        "bn1_mean": 0.1 * jax.random.normal(ks[4], (cout,), jnp.float32),
        "bn1_var": jax.random.uniform(ks[5], (cout,), jnp.float32, 0.5, 1.5),
        "w2": 0.1 * jax.random.normal(ks[6], (cout, cout, 3, 3), jnp.float32),
        "b2": 0.1 * jax.random.normal(ks[7], (cout,), jnp.float32),
        "bn2_gamma": 1.0 + 0.1 * jax.random.normal(ks[8], (cout,), jnp.float32),
        "bn2_beta": 0.1 * jax.random.normal(ks[9], (cout,), jnp.float32),
        "bn2_mean": 0.1 * jax.random.normal(ks[10], (cout,), jnp.float32),
        "bn2_var": jax.random.uniform(ks[11], (cout,), jnp.float32, 0.5, 1.5),
    }
    if stride > 1 or cin != cout:
        p.update({
            "ws": 0.1 * jax.random.normal(ks[12], (cout, cin, 1, 1), jnp.float32),
            "bns_gamma": 1.0 + 0.1 * jax.random.normal(ks[13], (cout,), jnp.float32),
            "bns_beta": 0.1 * jax.random.normal(ks[14], (cout,), jnp.float32),
            "bns_mean": 0.1 * jax.random.normal(ks[15], (cout,), jnp.float32),
            "bns_var": jax.random.uniform(ks[16], (cout,), jnp.float32, 0.5, 1.5),
        })
    return p


# ------------------------------ pure-JAX reference -----------------------------

def ref_forward(x, p, stride, eps=1e-5):
    def conv(x, w, b, s, pad):
        y = lax.conv_general_dilated(x, w, (s, s), [(pad, pad), (pad, pad)],
                                     dimension_numbers=("NCHW", "OIHW", "NCHW"),
                                     precision=lax.Precision.HIGHEST)
        return y if b is None else y + b[None, :, None, None]

    def bn(x, g, be, m, v):
        return (x - m[None, :, None, None]) / jnp.sqrt(v[None, :, None, None] + eps) \
               * g[None, :, None, None] + be[None, :, None, None]

    out = jax.nn.relu(bn(conv(x, p["w1"], p["b1"], stride, 1),
                         p["bn1_gamma"], p["bn1_beta"], p["bn1_mean"], p["bn1_var"]))
    out = bn(conv(out, p["w2"], p["b2"], 1, 1),
             p["bn2_gamma"], p["bn2_beta"], p["bn2_mean"], p["bn2_var"])
    if "ws" in p:
        res = bn(conv(x, p["ws"], None, stride, 0),
                 p["bns_gamma"], p["bns_beta"], p["bns_mean"], p["bns_var"])
    else:
        res = x
    return jax.nn.relu(out + res)


# ----------------------------------- main --------------------------------------

def _check(name, x, params, stride, cout, row_tile=None):
    out = jax.block_until_ready(
        residual_block_forward(x, params, stride, row_tile=row_tile))
    n, _, h, w = x.shape
    ho = (h - 1) // stride + 1
    wo = (w - 1) // stride + 1
    assert out.shape == (n, cout, ho, wo), (name, out.shape)
    ref = jax.block_until_ready(ref_forward(x, params, stride))
    # bf16 matmul operands with f32 accumulation -> modest tolerance vs f32 reference.
    if not bool(jnp.allclose(out, ref, rtol=2e-2, atol=5e-2)):
        err = float(jnp.max(jnp.abs(out - ref)))
        raise AssertionError(f"{name}: Pallas output does not match reference (max |err|={err})")


if __name__ == "__main__":
    key = jax.random.PRNGKey(0)
    k1, k2, k3, k4, k5, k6 = jax.random.split(key, 6)

    # 1) projection shortcut, stride 2 (Cin != Cout)
    x1 = jax.random.normal(k1, (2, 4, 16, 16), jnp.float32)
    p1 = init_params(k2, 4, 8, 2)
    _check("proj_s2", x1, p1, 2, 8)

    # 2) identity shortcut, stride 1 (Cin == Cout)
    x2 = jax.random.normal(k3, (2, 8, 16, 16), jnp.float32)
    p2 = init_params(k4, 8, 8, 1)
    _check("identity_s1", x2, p2, 1, 8)

    # 3) projection shortcut, stride 1, forced multi-row-tile path (ragged last tile)
    x3 = jax.random.normal(k5, (2, 4, 16, 16), jnp.float32)
    p3 = init_params(k6, 4, 8, 1)
    _check("proj_s1_tiled", x3, p3, 1, 8, row_tile=6)

    # 4) identity shortcut, N=1, forced multi-row-tile path
    x4 = jax.random.normal(k1, (1, 8, 16, 16), jnp.float32)
    _check("identity_s1_tiled", x4, p2, 1, 8, row_tile=6)

    print("KERNEL_OK")
</pallas_src>

<mosaic_0001>
module attributes {stable_mosaic.version = 11 : i64} {
  func.func @_resblock_kernel(%arg0: i32, %arg1: i32, %arg2: memref<1x1x192x12xbf16, #tpu.memory_space<vmem>>, %arg3: memref<1x1x192x12xbf16, #tpu.memory_space<vmem>>, %arg4: memref<3x12x8xbf16, #tpu.memory_space<vmem>>, %arg5: memref<1x8xf32, #tpu.memory_space<vmem>>, %arg6: memref<1x160x1xf32, #tpu.memory_space<vmem>>, %arg7: memref<3x24x128xbf16, #tpu.memory_space<vmem>>, %arg8: memref<1x128xf32, #tpu.memory_space<vmem>>, %arg9: memref<1x1x128x4xbf16, #tpu.memory_space<vmem>>, %arg10: memref<4x128xbf16, #tpu.memory_space<vmem>>, %arg11: memref<1x1x128x128xf32, #tpu.memory_space<vmem>>) attributes {dimension_semantics = [#tpu.dimension_semantics<parallel>, #tpu.dimension_semantics<parallel>], iteration_bounds = array<i64: 1, 2>, scalar_prefetch = 0 : i64, scratch_operands = 0 : i64, tpu.core_type = #tpu.core_type<tc>, window_params = [{transform_indices = @transform_0, window_bounds = array<i64: 1, 1, 192, 12>}, {transform_indices = @transform_1, window_bounds = array<i64: 1, 1, 192, 12>}, {pipeline_mode = #tpu.pipeline_mode<synchronous>, transform_indices = @transform_2, window_bounds = array<i64: 3, 12, 8>}, {pipeline_mode = #tpu.pipeline_mode<synchronous>, transform_indices = @transform_3, window_bounds = array<i64: 1, 8>}, {transform_indices = @transform_4, window_bounds = array<i64: 1, 160, 1>}, {pipeline_mode = #tpu.pipeline_mode<synchronous>, transform_indices = @transform_5, window_bounds = array<i64: 3, 24, 128>}, {pipeline_mode = #tpu.pipeline_mode<synchronous>, transform_indices = @transform_6, window_bounds = array<i64: 1, 128>}, {transform_indices = @transform_7, window_bounds = array<i64: 1, 1, 128, 4>}, {pipeline_mode = #tpu.pipeline_mode<synchronous>, transform_indices = @transform_8, window_bounds = array<i64: 4, 128>}, {transform_indices = @transform_9, window_bounds = array<i64: 1, 1, 128, 128>}]} {
    %c0 = arith.constant 0 : index
    %c0_0 = arith.constant 0 : index
    %c0_1 = arith.constant 0 : index
    %c0_2 = arith.constant 0 : index
    %0 = vector.load %arg2[%c0, %c0_0, %c0_1, %c0_2] : memref<1x1x192x12xbf16, #tpu.memory_space<vmem>>, vector<1x1x160x12xbf16>
    %1 = vector.shape_cast %0 : vector<1x1x160x12xbf16> to vector<160x12xbf16>
    %c0_3 = arith.constant 0 : index
    %c0_4 = arith.constant 0 : index
    %c0_5 = arith.constant 0 : index
    %2 = vector.load %arg4[%c0_3, %c0_4, %c0_5] : memref<3x12x8xbf16, #tpu.memory_space<vmem>>, vector<1x12x8xbf16>
    %3 = vector.shape_cast %2 : vector<1x12x8xbf16> to vector<12x8xbf16>
    %cst = arith.constant dense<0.000000e+00> : vector<160x8xf32>
    %4 = tpu.matmul %1, %3, %cst {dimension_numbers = #tpu.dot_dimension_numbers<[1], [0], [0], [1], [0, 0, 1, 1], [], []>} : vector<160x12xbf16>, vector<12x8xbf16>, vector<160x8xf32> -> vector<160x8xf32>
    %c0_6 = arith.constant 0 : index
    %c0_7 = arith.constant 0 : index
    %c0_8 = arith.constant 0 : index
    %c0_9 = arith.constant 0 : index
    %5 = vector.load %arg3[%c0_6, %c0_7, %c0_8, %c0_9] : memref<1x1x192x12xbf16, #tpu.memory_space<vmem>>, vector<1x1x160x12xbf16>
    %6 = vector.shape_cast %5 : vector<1x1x160x12xbf16> to vector<160x12xbf16>
    %c1 = arith.constant 1 : index
    %c0_10 = arith.constant 0 : index
    %c0_11 = arith.constant 0 : index
    %7 = vector.load %arg4[%c1, %c0_10, %c0_11] : memref<3x12x8xbf16, #tpu.memory_space<vmem>>, vector<1x12x8xbf16>
    %8 = vector.shape_cast %7 : vector<1x12x8xbf16> to vector<12x8xbf16>
    %cst_12 = arith.constant dense<0.000000e+00> : vector<160x8xf32>
    %9 = tpu.matmul %6, %8, %cst_12 {dimension_numbers = #tpu.dot_dimension_numbers<[1], [0], [0], [1], [0, 0, 1, 1], [], []>} : vector<160x12xbf16>, vector<12x8xbf16>, vector<160x8xf32> -> vector<160x8xf32>
    %10 = arith.addf %4, %9 : vector<160x8xf32>
    %c0_13 = arith.constant 0 : index
    %c0_14 = arith.constant 0 : index
    %c16 = arith.constant 16 : index
    %c0_15 = arith.constant 0 : index
    %11 = vector.load %arg2[%c0_13, %c0_14, %c16, %c0_15] : memref<1x1x192x12xbf16, #tpu.memory_space<vmem>>, vector<1x1x160x12xbf16>
    %12 = vector.shape_cast %11 : vector<1x1x160x12xbf16> to vector<160x12xbf16>
    %c2 = arith.constant 2 : index
    %c0_16 = arith.constant 0 : index
    %c0_17 = arith.constant 0 : index
    %13 = vector.load %arg4[%c2, %c0_16, %c0_17] : memref<3x12x8xbf16, #tpu.memory_space<vmem>>, vector<1x12x8xbf16>
    %14 = vector.shape_cast %13 : vector<1x12x8xbf16> to vector<12x8xbf16>
    %cst_18 = arith.constant dense<0.000000e+00> : vector<160x8xf32>
    %15 = tpu.matmul %12, %14, %cst_18 {dimension_numbers = #tpu.dot_dimension_numbers<[1], [0], [0], [1], [0, 0, 1, 1], [], []>} : vector<160x12xbf16>, vector<12x8xbf16>, vector<160x8xf32> -> vector<160x8xf32>
    %16 = arith.addf %10, %15 : vector<160x8xf32>
    %c0_19 = arith.constant 0 : index
    %c0_20 = arith.constant 0 : index
    %17 = vector.load %arg5[%c0_19, %c0_20] : memref<1x8xf32, #tpu.memory_space<vmem>>, vector<1x8xf32>
    %18 = vector.broadcast %17 : vector<1x8xf32> to vector<160x8xf32>
    %19 = arith.addf %16, %18 : vector<160x8xf32>
    %cst_21 = arith.constant 0.000000e+00 : f32
    %20 = vector.broadcast %cst_21 : f32 to vector<160x8xf32>
    %21 = arith.maximumf %19, %20 : vector<160x8xf32>
    %c0_22 = arith.constant 0 : index
    %c0_23 = arith.constant 0 : index
    %c0_24 = arith.constant 0 : index
    %22 = vector.load %arg6[%c0_22, %c0_23, %c0_24] : memref<1x160x1xf32, #tpu.memory_space<vmem>>, vector<1x160x1xf32>
    %23 = vector.shape_cast %22 : vector<1x160x1xf32> to vector<160x1xf32>
    %24 = vector.broadcast %23 : vector<160x1xf32> to vector<160x8xf32>
    %25 = arith.mulf %21, %24 : vector<160x8xf32>
    %26 = arith.truncf %25 : vector<160x8xf32> to vector<160x8xbf16>
    %cst_25 = arith.constant 0.000000e+00 : bf16
    %27 = vector.broadcast %cst_25 : bf16 to vector<8x8xbf16>
    %28 = tpu.concatenate %27, %26, %27 in 0 : vector<8x8xbf16>, vector<160x8xbf16>, vector<8x8xbf16> -> vector<176x8xbf16>
    %29 = vector.extract_strided_slice %28 {offsets = [7, 0], sizes = [160, 8], strides = [1, 1]} : vector<176x8xbf16> to vector<160x8xbf16>
    %30 = vector.extract_strided_slice %28 {offsets = [8, 0], sizes = [160, 8], strides = [1, 1]} : vector<176x8xbf16> to vector<160x8xbf16>
    %31 = vector.extract_strided_slice %28 {offsets = [9, 0], sizes = [160, 8], strides = [1, 1]} : vector<176x8xbf16> to vector<160x8xbf16>
    %32 = tpu.concatenate %29, %30, %31 in 1 : vector<160x8xbf16>, vector<160x8xbf16>, vector<160x8xbf16> -> vector<160x24xbf16>
    %33 = vector.extract_strided_slice %32 {offsets = [0, 0], sizes = [128, 24], strides = [1, 1]} : vector<160x24xbf16> to vector<128x24xbf16>
    %c0_26 = arith.constant 0 : index
    %c0_27 = arith.constant 0 : index
    %c0_28 = arith.constant 0 : index
    %34 = vector.load %arg7[%c0_26, %c0_27, %c0_28] : memref<3x24x128xbf16, #tpu.memory_space<vmem>>, vector<1x24x128xbf16>
    %35 = vector.shape_cast %34 : vector<1x24x128xbf16> to vector<24x128xbf16>
    %cst_29 = arith.constant dense<0.000000e+00> : vector<128x128xf32>
    %36 = tpu.matmul %33, %35, %cst_29 {dimension_numbers = #tpu.dot_dimension_numbers<[1], [0], [0], [1], [0, 0, 1, 1], [], []>} : vector<128x24xbf16>, vector<24x128xbf16>, vector<128x128xf32> -> vector<128x128xf32>
    %37 = vector.extract_strided_slice %32 {offsets = [16, 0], sizes = [128, 24], strides = [1, 1]} : vector<160x24xbf16> to vector<128x24xbf16>
    %c1_30 = arith.constant 1 : index
    %c0_31 = arith.constant 0 : index
    %c0_32 = arith.constant 0 : index
    %38 = vector.load %arg7[%c1_30, %c0_31, %c0_32] : memref<3x24x128xbf16, #tpu.memory_space<vmem>>, vector<1x24x128xbf16>
    %39 = vector.shape_cast %38 : vector<1x24x128xbf16> to vector<24x128xbf16>
    %cst_33 = arith.constant dense<0.000000e+00> : vector<128x128xf32>
    %40 = tpu.matmul %37, %39, %cst_33 {dimension_numbers = #tpu.dot_dimension_numbers<[1], [0], [0], [1], [0, 0, 1, 1], [], []>} : vector<128x24xbf16>, vector<24x128xbf16>, vector<128x128xf32> -> vector<128x128xf32>
    %41 = arith.addf %36, %40 : vector<128x128xf32>
    %42 = vector.extract_strided_slice %32 {offsets = [32, 0], sizes = [128, 24], strides = [1, 1]} : vector<160x24xbf16> to vector<128x24xbf16>
    %c2_34 = arith.constant 2 : index
    %c0_35 = arith.constant 0 : index
    %c0_36 = arith.constant 0 : index
    %43 = vector.load %arg7[%c2_34, %c0_35, %c0_36] : memref<3x24x128xbf16, #tpu.memory_space<vmem>>, vector<1x24x128xbf16>
    %44 = vector.shape_cast %43 : vector<1x24x128xbf16> to vector<24x128xbf16>
    %cst_37 = arith.constant dense<0.000000e+00> : vector<128x128xf32>
    %45 = tpu.matmul %42, %44, %cst_37 {dimension_numbers = #tpu.dot_dimension_numbers<[1], [0], [0], [1], [0, 0, 1, 1], [], []>} : vector<128x24xbf16>, vector<24x128xbf16>, vector<128x128xf32> -> vector<128x128xf32>
    %46 = arith.addf %41, %45 : vector<128x128xf32>
    %c0_38 = arith.constant 0 : index
    %c0_39 = arith.constant 0 : index
    %47 = vector.load %arg8[%c0_38, %c0_39] : memref<1x128xf32, #tpu.memory_space<vmem>>, vector<1x128xf32>
    %48 = vector.broadcast %47 : vector<1x128xf32> to vector<128x128xf32>
    %49 = arith.addf %46, %48 : vector<128x128xf32>
    %c0_40 = arith.constant 0 : index
    %c0_41 = arith.constant 0 : index
    %c0_42 = arith.constant 0 : index
    %c0_43 = arith.constant 0 : index
    %50 = vector.load %arg9[%c0_40, %c0_41, %c0_42, %c0_43] : memref<1x1x128x4xbf16, #tpu.memory_space<vmem>>, vector<1x1x128x4xbf16>
    %51 = vector.shape_cast %50 : vector<1x1x128x4xbf16> to vector<128x4xbf16>
    %c0_44 = arith.constant 0 : index
    %c0_45 = arith.constant 0 : index
    %52 = vector.load %arg10[%c0_44, %c0_45] : memref<4x128xbf16, #tpu.memory_space<vmem>>, vector<4x128xbf16>
    %cst_46 = arith.constant dense<0.000000e+00> : vector<128x128xf32>
    %53 = tpu.matmul %51, %52, %cst_46 {dimension_numbers = #tpu.dot_dimension_numbers<[1], [0], [0], [1], [0, 0, 1, 1], [], []>} : vector<128x4xbf16>, vector<4x128xbf16>, vector<128x128xf32> -> vector<128x128xf32>
    %54 = arith.addf %49, %53 : vector<128x128xf32>
    %cst_47 = arith.constant 0.000000e+00 : f32
    %55 = vector.broadcast %cst_47 : f32 to vector<128x128xf32>
    %56 = arith.maximumf %54, %55 : vector<128x128xf32>
    %c0_48 = arith.constant 0 : index
    %c0_49 = arith.constant 0 : index
    %c0_50 = arith.constant 0 : index
    %c0_51 = arith.constant 0 : index
    %57 = vector.load %arg11[%c0_48, %c0_49, %c0_50, %c0_51] : memref<1x1x128x128xf32, #tpu.memory_space<vmem>>, vector<1x1x128x128xf32>
    %58 = vector.shape_cast %57 : vector<1x1x128x128xf32> to vector<128x128xf32>
    %59 = vector.shape_cast %56 : vector<128x128xf32> to vector<1x1x128x128xf32>
    tpu.vector_store %arg11[%c0_48, %c0_49, %c0_50, %c0_51], %59 {strides = array<i32>} : memref<1x1x128x128xf32, #tpu.memory_space<vmem>>, vector<1x1x128x128xf32>,
    return
  }
  func.func @transform_0(%arg0: i32, %arg1: i32) -> (i32, i32, i32, i32) {
    %c0_i32 = arith.constant 0 : i32
    %c0_i32_0 = arith.constant 0 : i32
    %c0_i32_1 = arith.constant 0 : i32
    return %arg1, %arg0, %c0_i32, %c0_i32_0 : i32, i32, i32, i32
  }
  func.func @transform_1(%arg0: i32, %arg1: i32) -> (i32, i32, i32, i32) {
    %c0_i32 = arith.constant 0 : i32
    %c0_i32_0 = arith.constant 0 : i32
    %c0_i32_1 = arith.constant 0 : i32
    return %arg1, %arg0, %c0_i32, %c0_i32_0 : i32, i32, i32, i32
  }
  func.func @transform_2(%arg0: i32, %arg1: i32) -> (i32, i32, i32) {
    %c0_i32 = arith.constant 0 : i32
    %c0_i32_0 = arith.constant 0 : i32
    %c0_i32_1 = arith.constant 0 : i32
    %c0_i32_2 = arith.constant 0 : i32
    return %c0_i32, %c0_i32_0, %c0_i32_1 : i32, i32, i32
  }
  func.func @transform_3(%arg0: i32, %arg1: i32) -> (i32, i32) {
    %c0_i32 = arith.constant 0 : i32
    %c0_i32_0 = arith.constant 0 : i32
    %c0_i32_1 = arith.constant 0 : i32
    return %c0_i32, %c0_i32_0 : i32, i32
  }
  func.func @transform_4(%arg0: i32, %arg1: i32) -> (i32, i32, i32) {
    %c0_i32 = arith.constant 0 : i32
    %c0_i32_0 = arith.constant 0 : i32
    %c0_i32_1 = arith.constant 0 : i32
    return %arg0, %c0_i32, %c0_i32_0 : i32, i32, i32
  }
  func.func @transform_5(%arg0: i32, %arg1: i32) -> (i32, i32, i32) {
    %c0_i32 = arith.constant 0 : i32
    %c0_i32_0 = arith.constant 0 : i32
    %c0_i32_1 = arith.constant 0 : i32
    %c0_i32_2 = arith.constant 0 : i32
    return %c0_i32, %c0_i32_0, %c0_i32_1 : i32, i32, i32
  }
  func.func @transform_6(%arg0: i32, %arg1: i32) -> (i32, i32) {
    %c0_i32 = arith.constant 0 : i32
    %c0_i32_0 = arith.constant 0 : i32
    %c0_i32_1 = arith.constant 0 : i32
    return %c0_i32, %c0_i32_0 : i32, i32
  }
  func.func @transform_7(%arg0: i32, %arg1: i32) -> (i32, i32, i32, i32) {
    %c0_i32 = arith.constant 0 : i32
    %c0_i32_0 = arith.constant 0 : i32
    %c0_i32_1 = arith.constant 0 : i32
    return %arg1, %arg0, %c0_i32, %c0_i32_0 : i32, i32, i32, i32
  }
  func.func @transform_8(%arg0: i32, %arg1: i32) -> (i32, i32) {
    %c0_i32 = arith.constant 0 : i32
    %c0_i32_0 = arith.constant 0 : i32
    %c0_i32_1 = arith.constant 0 : i32
    return %c0_i32, %c0_i32_0 : i32, i32
  }
  func.func @transform_9(%arg0: i32, %arg1: i32) -> (i32, i32, i32, i32) {
    %c0_i32 = arith.constant 0 : i32
    %c0_i32_0 = arith.constant 0 : i32
    %c0_i32_1 = arith.constant 0 : i32
    return %arg1, %arg0, %c0_i32, %c0_i32_0 : i32, i32, i32, i32
  }
}

</mosaic_0001>

<bundles_post_ra>
// kernel: tpu_custom_call.1
= control target key start
LH: loop header
LB: loop body
LE: loop exit
PB: predicated region body
PF: predicated region fallthrough
CT: control target
= control target key end

     0   :  { %14 = vsyncpa [#allocation3], 0  ;;  %s3278_s0 = inlined_call_operand.vmem [shape: bf16[2,1,192,12], index: 0, kind: input, shape index: {}]   ;;  %s3279_s1 = inlined_call_operand.vmem [shape: bf16[2,1,192,12], index: 1, kind: input, shape index: {}]   ;;  %s3280_s2 = inlined_call_operand.vmem [shape: bf16[3,12,8], index: 2, kind: input, shape index: {}]   ;;  %s3281_s3 = inlined_call_operand.vmem [shape: f32[1,8], index: 3, kind: input, shape index: {}]   ;;  %s3282_s4 = inlined_call_operand.vmem [shape: f32[1,160,1], index: 4, kind: input, shape index: {}]   ;;  %s3283_s5 = inlined_call_operand.vmem [shape: bf16[3,24,128], index: 5, kind: input, shape index: {}]   ;;  %s3284_s6 = inlined_call_operand.vmem [shape: f32[1,128], index: 6, kind: input, shape index: {}]   ;;  %s3285_s7 = inlined_call_operand.vmem [shape: bf16[2,1,128,4], index: 7, kind: input, shape index: {}]   ;;  %s3286_s8 = inlined_call_operand.vmem [shape: bf16[4,128], index: 8, kind: input, shape index: {}]   ;;  %s3287_s9 = inlined_call_operand.hbm [shape: f32[2,1,128,128], index: 9, kind: output, shape index: {}]  }
   0x1   :  { %16 = vsyncpa [#allocation3 + $0x1], 0  ;;  %s2640_s30 = smov 0   ;;  %s2642_s10 = smov 0  }
   0x2   :  { %s2644_s11 = smov 0   ;;  %s2646_s12 = smov 0  }
   0x3   :  { %s2648_s13 = smov 0   ;;  %s2650_s14 = smov 0  }
   0x4 LB: > { %s2129_s15 = sadd.s32 4294967295, %s2584_s14   ;;  %s2130_s16 = sadd.s32 4294967294, %s2584_s14   ;;  %s2584_s14 = sphi %s2650_s14, %s22_s14   ;;  %s2580_s13 = sphi %s2648_s13, %s3296_s13   ;;  %s2576_s12 = sphi %s2646_s12, %s3295_s12   ;;  %s2572_s11 = sphi %s2644_s11, %s3294_s11   ;;  %s2568_s10 = sphi %s2642_s10, %s3293_s10   ;;  %s2564_s30 = sphi %s2640_s30, %s3292_s30  }
   0x5   : > { %s31_s17 = sadd.s32 1, %s2580_s13  ;;  %s258_s18 = sadd.s32 1, %s2572_s11 }
   0x6   : > { %p32_p0 = scmp.ge.s32.totalorder %s31_s17, 2  ;;  %p268_p1 = scmp.ne.s32.totalorder %s2572_s11, %s2568_s10 }
   0x7   : > { %p269_p2 = scmp.eq.s32.totalorder %s2129_s15, 1  ;;  %p274_p3 = scmp.ne.s32.totalorder %s2568_s10, %s2564_s30 }
   0x8   : > { %s3298_s17 = smov (%p32_p0, %s31_s17), 0  ;;  %p275_p5 = scmp.eq.s32.totalorder %s2130_s16, 1 }
   0x9   : > { %p2680_p4 = por %p269_p2, %p268_p1  ;;  %s253_s20 = ssub.s32 %s2580_s13, %s3298_s17 }
   0xa   : > { %p2134_p6 = scmp.ge.s32.totalorder %s2584_s14, 1  ;;  %p256_p7 = scmp.eq.s32.totalorder %s253_s20, 0 }
   0xb   : > { %p2687_p8 = por %p275_p5, %p274_p3  ;;  %p352_p9 = scmp.lt.s32.totalorder %s2584_s14, 3 }
   0xc   : > { %s2693_s22 = scalar_select %p256_p7, %s2572_s11, %s258_s18  }
   0xd   : > { %p353_p10 = pnand %p2134_p6, %p352_p9 }
   0xe   : > { %p415_p11 = scmp.lt.s32.totalorder (!%p353_p10), %s2576_s12, 1  ;;  %s3288_s23 = smov (!%p353_p10), 8  }
   0xf   : > { %356 = sbr.rel (%p353_p10) target bundleno = 880 (0x370), region = 56  ;;  %s412_s27 = sand.u32 (!%p353_p10), 1, %s2568_s10  }
  0x10   : > { %s2135_s28 = sshll.u32 (!%p353_p10), %s412_s27, 7  ;;  %s2438_s15 = sshll.u32 (!%p353_p10), %s2576_s12, 7 }
  0x11   : > { %s3192_s29 = scalar_lea.vmem (!%p353_p10), [#allocation2], %s2135_s28 }
  0x14   : > { %v2184_v0 = vld [vmem:[%s3280_s2 + $0x8] sm:$0xf]  ;;  %v2415_v1 = vld [vmem:[%s3280_s2 + $0x8] sm:$0x30]  ;;  %vm579_vm0 = vcmask 1045504   ;;  %s2709_s16 = scalar_select %p415_p11, %s2576_s12, 1 }
  0x15   : > { %v2185_v2 = vor.u32 %v2415_v1, %v2184_v0  ;;  %v2238_v3 = vld [vmem:[%s3280_s2] sm:$0xf]  ;;  %v2404_v4 = vld [vmem:[%s3280_s2] sm:$0x30]  ;;  %vm548_vm1 = vcmask 97280   ;;  %v1024_v22 = vld [vmem:[%s3282_s4 + $0x8] sm:$0xff] }
  0x16   : > { %v2239_v5 = vor.u32 %v2404_v4, %v2238_v3  ;;  %s2441_s18 = smul.u32 96, %s2709_s16  ;;  %v2294_v9 = vld [vmem:[%s3280_s2 + $0x10] sm:$0xf]  ;;  %v2426_v10 = vld [vmem:[%s3280_s2 + $0x10] sm:$0x30]  ;;  %v2586_v23 = vmov 0  }
  0x17   : > { %v581_v6 = vsel %vm579_vm0, %v2185_v2, 0  ;;  %v2295_v11 = vor.u32 %v2426_v10, %v2294_v9  ;;  %2501 = vset.pattern.permute.xlu0 %v2586_v23  ;;  %2502 = vset.pattern.permute.xlu1 %v2586_v23  ;;  %v1025_v25 = vld [vmem:[%s3282_s4 + $0x10] sm:$0xff]  ;;  %v1026_v26 = vld [vmem:[%s3282_s4 + $0x18] sm:$0xff]  ;;  %v1027_v29 = vld [vmem:[%s3282_s4 + $0x20] sm:$0xff]  ;;  %vm1350_vm2 = vcmask 1046528   ;;  %vm1234_vm4 = vcmask 1043456  }
  0x18   : > { %2439 = vmatpush.bf16.msra.mxu2 %v581_v6  ;;  %v728_v7 = vsel %vm579_vm0, %v2239_v5, 0  ;;  %590 = vmatpush.bf16.msra.mxu0 %v581_v6  ;;  %s2717_s24 = scalar_lea.vmem %s3279_s1, %s2441_s18  ;;  %s2732_s20 = scalar_lea.vmem %s3278_s0, %s2441_s18  ;;  %v1031_v31 = vld [vmem:[%s3282_s4 + $0x40] sm:$0xff]  ;;  %v1030_v32 = vld [vmem:[%s3282_s4 + $0x38] sm:$0xff]  ;;  %v1033_v36 = vld [vmem:[%s3282_s4 + $0x50] sm:$0xff]  ;;  %vm1240_vm3 = vsmask.f32 7424 }
  0x19   : > { %737 = vmatpush.bf16.msra.mxu1 %v728_v7  ;;  %v2413_v8 = vld [vmem:[%s2717_s24 + $0x40] sm:$0xff]  ;;  %v898_v12 = vsel %vm579_vm0, %v2295_v11, 0  ;;  %v2414_v13 = vld [vmem:[%s2717_s24 + $0x48] sm:$0xff]  ;;  %v2407_v20 = vld [vmem:[%s2717_s24 + $0x10] sm:$0xff]  ;;  %1050 = vperm.xlu0 %2501, %v1024_v22   ;;  %vm1394_vm5 = vcmask 64512   ;;  %vm1417_vm6 = vcmask 130048   ;;  %s1986_s18 = scalar_lea.hbm %s3287_s9, %s2438_s15 }
  0x1a   : > { %v2405_v14 = vld [vmem:[%s2717_s24] sm:$0xff]  ;;  %v2406_v17 = vld [vmem:[%s2717_s24 + $0x8] sm:$0xff]  ;;  %v2396_v21 = vld [vmem:[%s2732_s20 + $0x10] sm:$0xff]  ;;  %2503 = vset.pattern.permute.xlu2 %v2586_v23  ;;  %1060 = vperm.xlu1 %2502, %v1026_v26   ;;  %vm1447_vm7 = vsmask.f32 4352  ;;  %vm1528_vm8 = vcmask 195584  }
  0x1b   : > { %2194 = vmatmul.msk.bf16.vlgmr.msra.gmra.mxu2 %vm548_vm1, %v2413_v8  ;;  %v2394_v15 = vld [vmem:[%s2732_s20] sm:$0xff]  ;;  %2186 = vmatmul.msk.bf16.vlgmr.msra.gmra.mxu0 %vm548_vm1, %v2405_v14  ;;  %v2395_v18 = vld [vmem:[%s2732_s20 + $0x8] sm:$0xff]  ;;  %v2408_v27 = vld [vmem:[%s2717_s24 + $0x18] sm:$0xff]  ;;  %vm1871_vm9 = vcmask 1041408   ;;  %vm1846_vm10 = vcmask 31744   ;;  %s1973_s12 = scalar_lea.sflag [#allocation3], %s412_s27 }
  0x1c   : > { %2440 = vmatpush.bf16.msrb.mxu2 %v728_v7  ;;  %2240 = vmatmul.msk.bf16.vlgmr.msra.gmra.mxu1 %vm548_vm1, %v2394_v15  ;;  %v2402_v16 = vld [vmem:[%s2732_s20 + $0x40] sm:$0xff]  ;;  %v2403_v19 = vld [vmem:[%s2732_s20 + $0x48] sm:$0xff]  ;;  %v2397_v28 = vld [vmem:[%s2732_s20 + $0x18] sm:$0xff] }
  0x1d   : > { %v2416_v24 = vld [vmem:[%s2732_s20 + $0x8] sm:$0xff]  ;;  %v2417_v30 = vld [vmem:[%s2732_s20 + $0x10] sm:$0xff]  ;;  %v2409_v33 = vld [vmem:[%s2717_s24 + $0x20] sm:$0xff] }
  0x1e   : > { %v2398_v34 = vld [vmem:[%s2732_s20 + $0x20] sm:$0xff]  ;;  %v1034_v35 = vld [vmem:[%s3282_s4 + $0x58] sm:$0xff]  ;;  %v1028_v38 = vld [vmem:[%s3282_s4 + $0x28] sm:$0xff] }
  0x1f   : > { %v2418_v37 = vld [vmem:[%s2732_s20 + $0x18] sm:$0xff]  ;;  %1070 = vperm.xlu2 %2503, %v1028_v38   ;;  %v1029_v39 = vld [vmem:[%s3282_s4 + $0x30] sm:$0xff]  ;;  %v2410_v40 = vld [vmem:[%s2717_s24 + $0x28] sm:$0xff] }
  0x20   : > { %907 = vmatpush.bf16.msra.mxu2 %v898_v12  ;;  %v2399_v41 = vld [vmem:[%s2732_s20 + $0x28] sm:$0xff]  ;;  %v2419_v42 = vld [vmem:[%s2732_s20 + $0x20] sm:$0xff]  ;;  %v2411_v46 = vld [vmem:[%s2717_s24 + $0x30] sm:$0xff] }
  0x21   : > { %1055 = vperm.xlu0 %2501, %v1025_v25   ;;  %v1032_v43 = vld [vmem:[%s3282_s4 + $0x48] sm:$0xff]  ;;  %v1035_v44 = vld [vmem:[%s3282_s4 + $0x60] sm:$0xff]  ;;  %v2400_v47 = vld [vmem:[%s2732_s20 + $0x30] sm:$0xff] }
  0x22   : > { %1065 = vperm.xlu1 %2502, %v1027_v29   ;;  %v2420_v45 = vld [vmem:[%s2732_s20 + $0x28] sm:$0xff]  ;;  %v2421_v50 = vld [vmem:[%s2732_s20 + $0x30] sm:$0xff]  ;;  %v2422_v56 = vld [vmem:[%s2732_s20 + $0x38] sm:$0xff] }
  0x23   : > { %v2423_v61 = vld [vmem:[%s2732_s20 + $0x40] sm:$0xff]  ;;  %v2412_v63 = vld [vmem:[%s2717_s24 + $0x38] sm:$0xff]  ;;  %v2424_v8 = vld [vmem:[%s2732_s20 + $0x48] sm:$0xff]  ;;  %s2526_s24 = scalar_lea.hbm %s3287_s9, 256 }
  0x24   : > { %v2401_v0 = vld [vmem:[%s2732_s20 + $0x38] sm:$0xff]  ;;  %v2425_v14 = vld [vmem:[%s2732_s20 + $0x50] sm:$0xff]  ;;  %v2840_v22 = vld [vmem:[%s3281_s3] ss:$0 sm:$0xff]  ;;  %s2587_s20 = smov 16  }
  0x27   : > { %1075 = vperm.xlu2 %2503, %v1029_v39  }
  0x29   : > { %1080 = vperm.xlu0 %2501, %v1030_v32  }
  0x2a   : > { %1085 = vperm.xlu1 %2502, %v1031_v31  }
  0x2b   : > { %2195 = vmatmul.msk.bf16.gmra.mxu2 %vm548_vm1, %v2414_v13  ;;  %2187 = vmatmul.msk.bf16.gmra.mxu0 %vm548_vm1, %v2406_v17 }
  0x2c   : > { %2241 = vmatmul.msk.bf16.gmra.mxu1 %vm548_vm1, %v2395_v18 }
  0x2f   : > { %1090 = vperm.xlu2 %2503, %v1032_v43  }
  0x31   : > { %1095 = vperm.xlu0 %2501, %v1033_v36  }
  0x32   : > { %1100 = vperm.xlu1 %2502, %v1034_v35  }
  0x37   : > { %1105 = vperm.xlu2 %2503, %v1035_v44  }
  0x3b   : > { %2248 = vmatmul.msk.bf16.vlgmr.msrb.gmra.mxu2 %vm548_vm1, %v2402_v16  ;;  %2188 = vmatmul.msk.bf16.gmra.mxu0 %vm548_vm1, %v2407_v20 }
  0x3c   : > { %2242 = vmatmul.msk.bf16.gmra.mxu1 %vm548_vm1, %v2396_v21 }
  0x4b   : > { %2249 = vmatmul.msk.bf16.gmra.mxu2 %vm548_vm1, %v2403_v19  ;;  %2189 = vmatmul.msk.bf16.gmra.mxu0 %vm548_vm1, %v2408_v27 }
  0x4c   : > { %2243 = vmatmul.msk.bf16.gmra.mxu1 %vm548_vm1, %v2397_v28 }
  0x5b   : > { %2296 = vmatmul.msk.bf16.vlgmr.msra.gmra.mxu2 %vm548_vm1, %v2416_v24  ;;  %2190 = vmatmul.msk.bf16.gmra.mxu0 %vm548_vm1, %v2409_v33 }
  0x5c   : > { %2244 = vmatmul.msk.bf16.gmra.mxu1 %vm548_vm1, %v2398_v34 }
  0x6b   : > { %2297 = vmatmul.msk.bf16.gmra.mxu2 %vm548_vm1, %v2417_v30  ;;  %2191 = vmatmul.msk.bf16.gmra.mxu0 %vm548_vm1, %v2410_v40 }
  0x6c   : > { %2245 = vmatmul.msk.bf16.gmra.mxu1 %vm548_vm1, %v2399_v41 }
  0x7b   : > { %2298 = vmatmul.msk.bf16.gmra.mxu2 %vm548_vm1, %v2418_v37  ;;  %2192 = vmatmul.msk.bf16.gmra.mxu0 %vm548_vm1, %v2411_v46 }
  0x7c   : > { %2246 = vmatmul.msk.bf16.gmra.mxu1 %vm548_vm1, %v2400_v47 }
  0x8b   : > { %2299 = vmatmul.msk.bf16.gmra.mxu2 %vm548_vm1, %v2419_v42  ;;  %2193 = vmatmul.msk.bf16.gmra.mxu0 %vm548_vm1, %v2412_v63  ;;  %v1051_v16 = vpop.permute.xlu0 %1050 }
  0x8c   : > { %2247 = vmatmul.msk.bf16.gmra.mxu1 %vm548_vm1, %v2401_v0  ;;  %v1061_v37 = vpop.permute.xlu1 %1060 }
  0x93   : > { %v1056_v28 = vpop.permute.xlu0 %1055 }
  0x98   : > { %v592_v52 = vpop.f32.mrf.mxu0 }
  0x99   : > { %v739_v53 = vpop.f32.mrf.mxu1 }
  0x9a   : > { %v740_v54 = vadd.f32 %v739_v53, %v592_v52  ;;  %v1066_v52 = vpop.permute.xlu1 %1065 }
  0x9b   : > { %2300 = vmatmul.msk.bf16.gmra.mxu2 %vm548_vm1, %v2420_v45 }
  0x9e   : > { %v632_v48 = vpop.f32.mrf.mxu2 }
  0xa0   : > { %v594_v62 = vpop.f32.mrf.mxu0 }
  0xa1   : > { %v741_v1 = vpop.f32.mrf.mxu1 }
  0xa2   : > { %v742_v18 = vadd.f32 %v741_v1, %v594_v62 }
  0xa6   : > { %v634_v49 = vpop.f32.mrf.mxu2 }
  0xa8   : > { %v597_v4 = vpop.f32.mrf.mxu0 }
  0xa9   : > { %v744_v6 = vpop.f32.mrf.mxu1 }
  0xaa   : > { %v745_v19 = vadd.f32 %v744_v6, %v597_v4  ;;  %v1071_v4 = vpop.permute.xlu2 %1070 }
  0xab   : > { %2301 = vmatmul.msk.bf16.gmra.mxu2 %vm548_vm1, %v2421_v50 }
  0xae   : > { %v637_v51 = vpop.f32.mrf.mxu2 }
  0xb0   : > { %v599_v11 = vpop.f32.mrf.mxu0 }
  0xb1   : > { %v746_v12 = vpop.f32.mrf.mxu1 }
  0xb2   : > { %v747_v31 = vadd.f32 %v746_v12, %v599_v11 }
  0xb6   : > { %v639_v55 = vpop.f32.mrf.mxu2 }
  0xb8   : > { %v602_v15 = vpop.f32.mrf.mxu0 }
  0xb9   : > { %v749_v17 = vpop.f32.mrf.mxu1 }
  0xba   : > { %v750_v39 = vadd.f32 %v749_v17, %v602_v15 }
  0xbb   : > { %2302 = vmatmul.msk.bf16.gmra.mxu2 %vm548_vm1, %v2422_v56 }
  0xbe   : > { %v779_v57 = vpop.f32.mrf.mxu2 }
  0xbf   : > { %v2817_v58 = vadd.f32 %v779_v57, %v632_v48 }
  0xc0   : > { %v604_v27 = vpop.f32.mrf.mxu0 }
  0xc1   : > { %v751_v29 = vpop.f32.mrf.mxu1 }
  0xc6   : > { %v781_v59 = vpop.f32.mrf.mxu2 }
  0xc7   : > { %v2819_v60 = vadd.f32 %v781_v59, %v634_v49 }
  0xc8   : > { %v607_v42 = vpop.f32.mrf.mxu0 }
  0xc9   : > { %v754_v44 = vpop.f32.mrf.mxu1 }
  0xca   : > { %v755_v6 = vadd.f32 %v754_v44, %v607_v42 }
  0xcb   : > { %2303 = vmatmul.msk.bf16.gmra.mxu2 %vm548_vm1, %v2423_v61 }
  0xce   : > { %v784_v2 = vpop.f32.mrf.mxu2 }
  0xcf   : > { %v2827_v3 = vadd.f32 %v784_v2, %v637_v51 }
  0xd0   : > { %v609_v61 = vpop.f32.mrf.mxu0 }
  0xd1   : > { %v756_v63 = vpop.f32.mrf.mxu1 }
  0xd6   : > { %v786_v5 = vpop.f32.mrf.mxu2 }
  0xd7   : > { %v2829_v7 = vadd.f32 %v786_v5, %v639_v55 }
  0xdb   : > { %2304 = vmatmul.msk.bf16.gmra.mxu2 %vm548_vm1, %v2424_v8 }
  0xde   : > { %v909_v9 = vpop.f32.mrf.mxu2 }
  0xdf   : > { %v2833_v10 = vadd.f32 %v909_v9, %v740_v54  ;;  %v752_v54 = vadd.f32 %v751_v29, %v604_v27  ;;  %v1076_v27 = vpop.permute.xlu2 %1075  ;;  %v757_v29 = vadd.f32 %v756_v63, %v609_v61 }
  0xe6   : > { %v911_v13 = vpop.f32.mrf.mxu2 }
  0xe7   : > { %v960_v20 = vadd.f32 %v911_v13, %v742_v18 }
  0xe9   : > { %v984_v24 = vadd.f32 %v2840_v22, %v960_v20 }
  0xeb   : > { %2305 = vmatmul.msk.bf16.gmra.mxu2 %vm548_vm1, %v2425_v14  ;;  %v1004_v30 = vmax.f32 %v984_v24, 0.0  ;;  %v612_v24 = vpop.f32.mrf.mxu0 }
  0xed   : > { %v1144_v35 = vmul.f32 %v1051_v16, %v1004_v30 }
  0xee   : > { %v914_v21 = vpop.f32.mrf.mxu2 }
  0xef   : > { %v961_v23 = vadd.f32 %v914_v21, %v745_v19  ;;  %v1164_v40 = vpack.c.bf16 %v1144_v35, %v1144_v35 }
  0xf1   : > { %v985_v25 = vadd.f32 %v2840_v22, %v961_v23  ;;  %v1204_v47 = vunpack.c.l.b16 %v1164_v40 }
  0xf3   : > { %v1005_v26 = vmax.f32 %v985_v25, 0.0  ;;  %v759_v25 = vpop.f32.mrf.mxu1  ;;  %v614_v40 = vpop.f32.mrf.mxu0 }
  0xf5   : > { %v1145_v33 = vmul.f32 %v1056_v28, %v1005_v26 }
  0xf6   : > { %v916_v32 = vpop.f32.mrf.mxu2 }
  0xf7   : > { %v962_v34 = vadd.f32 %v916_v32, %v747_v31  ;;  %v1165_v38 = vpack.c.bf16 %v1145_v33, %v1145_v33  ;;  %v1037_v31 = vld [vmem:[%s3282_s4 + $0x70] sm:$0xff] }
  0xf9   : > { %v986_v36 = vadd.f32 %v2840_v22, %v962_v34  ;;  %v1205_v45 = vunpack.c.l.b16 %v1165_v38 }
  0xfb   : > { %v1006_v41 = vmax.f32 %v986_v36, 0.0  ;;  %v2846_v50 = vpack.c.b16 %v1205_v45, %v1204_v47 }
  0xfd   : > { %v1146_v48 = vmul.f32 %v1061_v37, %v1006_v41  ;;  %v1248_v62 = vshll.u32 %v2846_v50, 16  ;;  %v1352_v9 = vrot.slane %v2846_v50, 1  ;;  %v1252_v13 = vshrl.u32 %v2846_v50, 16  ;;  %v761_v41 = vpop.f32.mrf.mxu1 }
  0xfe   : > { %v919_v43 = vpop.f32.mrf.mxu2 }
  0xff   : > { %v963_v46 = vadd.f32 %v919_v43, %v750_v39  ;;  %v1166_v53 = vpack.c.bf16 %v1146_v48, %v1146_v48  ;;  %v2852_v8 = vrot.slane %v1248_v62, 1  ;;  %v760_v39 = vadd.f32 %v759_v25, %v612_v24  ;;  %v1038_v43 = vld [vmem:[%s3282_s4 + $0x78] sm:$0xff] }
 0x100   : > { %v762_v62 = vadd.f32 %v761_v41, %v614_v40 }
 0x101   : > { %v987_v49 = vadd.f32 %v2840_v22, %v963_v46  ;;  %v1206_v0 = vunpack.c.l.b16 %v1166_v53  ;;  %v1254_v18 = vor.u32 %v1252_v13, %v2852_v8  ;;  %v1081_v53 = vpop.permute.xlu0 %1080 }
 0x103   : > { %v1007_v51 = vmax.f32 %v987_v49, 0.0 }
 0x105   : > { %v1147_v55 = vmul.f32 %v1066_v52, %v1007_v51 }
 0x106   : > { %v921_v56 = vpop.f32.mrf.mxu2 }
 0x107   : > { %v1167_v57 = vpack.c.bf16 %v1147_v55, %v1147_v55  ;;  %v964_v59 = vadd.f32 %v921_v56, %v752_v54 }
 0x109   : > { %v1207_v1 = vunpack.c.l.b16 %v1167_v57  ;;  %v988_v2 = vadd.f32 %v2840_v22, %v964_v59  ;;  %v1086_v59 = vpop.permute.xlu1 %1085 }
 0x10b   : > { %v2850_v5 = vpack.c.b16 %v1207_v1, %v1206_v0  ;;  %v1008_v11 = vmax.f32 %v988_v2, 0.0  ;;  %v617_v0 = vpop.f32.mrf.mxu0  ;;  %v764_v1 = vpop.f32.mrf.mxu1 }
 0x10d   : > { %v1354_v12 = vrot.slane %v2850_v5, 1  ;;  %v1256_v14 = vshll.u32 %v2850_v5, 16  ;;  %v1148_v20 = vmul.f32 %v1071_v4, %v1008_v11  ;;  %v1260_v45 = vshrl.u32 %v2850_v5, 16  ;;  %v1036_v11 = vld [vmem:[%s3282_s4 + $0x68] sm:$0xff] }
 0x10e   : > { %v924_v15 = vpop.f32.mrf.mxu2 }
 0x10f   : > { %v965_v16 = vadd.f32 %v924_v15, %v755_v6  ;;  %v1355_v17 = vsel %vm1350_vm2, %v1352_v9, %v1354_v12  ;;  %v1258_v19 = vrot.slane %v1256_v14, 1  ;;  %v1168_v28 = vpack.c.bf16 %v1148_v20, %v1148_v20 }
 0x110   : > { %1374 = vrot.lane.b32.xlu2 %v1355_v17, %s2587_s20 }
 0x111   : > { %v989_v21 = vadd.f32 %v2840_v22, %v965_v16  ;;  %v1259_v23 = vsel %vm1240_vm3, %v1254_v18, %v1258_v19  ;;  %v1208_v35 = vunpack.c.l.b16 %v1168_v28  ;;  %v1262_v51 = vor.u32 %v1260_v45, %v1258_v19 }
 0x112   : > { %1328 = vrot.lane.b32.xlu0 %v1259_v23, %s3288_s23  ;;  %v765_v16 = vadd.f32 %v764_v1, %v617_v0  ;;  %v1091_v23 = vpop.permute.xlu2 %1090 }
 0x113   : > { %v1009_v26 = vmax.f32 %v989_v21, 0.0  ;;  %v766_v28 = vpop.f32.mrf.mxu1 }
 0x115   : > { %v1149_v30 = vmul.f32 %v1076_v27, %v1009_v26  ;;  %v619_v27 = vpop.f32.mrf.mxu0 }
 0x116   : > { %v926_v32 = vpop.f32.mrf.mxu2 }
 0x117   : > { %v1169_v33 = vpack.c.bf16 %v1149_v30, %v1149_v30  ;;  %v966_v34 = vadd.f32 %v926_v32, %v757_v29 }
 0x118   : > { %1115 = vperm.xlu2 %2503, %v1037_v31  }
 0x119   : > { %v1209_v36 = vunpack.c.l.b16 %v1169_v33  ;;  %v990_v37 = vadd.f32 %v2840_v22, %v966_v34  ;;  %v1096_v34 = vpop.permute.xlu0 %1095 }
 0x11b   : > { %v2870_v38 = vpack.c.b16 %v1209_v36, %v1208_v35  ;;  %v1010_v42 = vmax.f32 %v990_v37, 0.0  ;;  %v767_v36 = vadd.f32 %v766_v28, %v619_v27  ;;  %v1023_v28 = vld [vmem:[%s3282_s4] sm:$0xff] }
 0x11d   : > { %v1356_v44 = vrot.slane %v2870_v38, 1  ;;  %v1264_v46 = vshll.u32 %v2870_v38, 16  ;;  %v1150_v54 = vmul.f32 %v1081_v53, %v1010_v42  ;;  %v1268_v19 = vshrl.u32 %v2870_v38, 16  ;;  %v1039_v42 = vld [vmem:[%s3282_s4 + $0x80] sm:$0xff] }
 0x11e   : > { %v929_v47 = vpop.f32.mrf.mxu2 }
 0x11f   : > { %v967_v48 = vadd.f32 %v929_v47, %v760_v39  ;;  %v1357_v49 = vsel %vm1350_vm2, %v1354_v12, %v1356_v44  ;;  %v1266_v52 = vrot.slane %v1264_v46, 1  ;;  %v1170_v61 = vpack.c.bf16 %v1150_v54, %v1150_v54 }
 0x120   : > { %1120 = vperm.xlu2 %2503, %v1038_v43   ;;  %1376 = vrot.lane.b32.xlu0 %v1357_v49, %s2587_s20  ;;  %v622_v43 = vpop.f32.mrf.mxu0 }
 0x121   : > { %v991_v55 = vadd.f32 %v2840_v22, %v967_v48  ;;  %v1267_v56 = vsel %vm1240_vm3, %v1262_v51, %v1266_v52  ;;  %v1210_v12 = vunpack.c.l.b16 %v1170_v61  ;;  %v1270_v25 = vor.u32 %v1268_v19, %v1266_v52 }
 0x122   : > { %1330 = vrot.lane.b32.xlu1 %v1267_v56, %s3288_s23 }
 0x123   : > { %v1011_v57 = vmax.f32 %v991_v55, 0.0 }
 0x125   : > { %v1151_v63 = vmul.f32 %v1086_v59, %v1011_v57 }
 0x126   : > { %v931_v2 = vpop.f32.mrf.mxu2 }
 0x127   : > { %v1171_v4 = vpack.c.bf16 %v1151_v63, %v1151_v63  ;;  %v968_v6 = vadd.f32 %v931_v2, %v762_v62  ;;  %v1040_v62 = vld [vmem:[%s3282_s4 + $0x88] sm:$0xff]  ;;  %v1101_v63 = vpop.permute.xlu1 %1100 }
 0x129   : > { %v1211_v13 = vunpack.c.l.b16 %v1171_v4  ;;  %v992_v14 = vadd.f32 %v2840_v22, %v968_v6  ;;  %v1106_v6 = vpop.permute.xlu2 %1105 }
 0x12a   : > { %1110 = vperm.xlu1 %2502, %v1036_v11  }
 0x12b   : > { %v2887_v15 = vpack.c.b16 %v1211_v13, %v1210_v12  ;;  %v1012_v17 = vmax.f32 %v992_v14, 0.0  ;;  %v1041_v14 = vld [vmem:[%s3282_s4 + $0x90] sm:$0xff] }
 0x12d   : > { %v1358_v18 = vrot.slane %v2887_v15, 1  ;;  %v1272_v20 = vshll.u32 %v2887_v15, 16  ;;  %v1152_v29 = vmul.f32 %v1091_v23, %v1012_v17  ;;  %v1276_v53 = vshrl.u32 %v2887_v15, 16 }
 0x12e   : > { %v934_v21 = vpop.f32.mrf.mxu2 }
 0x12f   : > { %v969_v24 = vadd.f32 %v934_v21, %v765_v16  ;;  %v1274_v26 = vrot.slane %v1272_v20, 1  ;;  %v1359_v31 = vsel %vm1350_vm2, %v1356_v44, %v1358_v18  ;;  %v1172_v35 = vpack.c.bf16 %v1152_v29, %v1152_v29  ;;  %v769_v44 = vpop.f32.mrf.mxu1  ;;  %v2308_v29 = vld [vmem:[%s3283_s5 + $0x14] sm:$0xf] }
 0x130   : > { %v770_v49 = vadd.f32 %v769_v44, %v622_v43 }
 0x131   : > { %v993_v30 = vadd.f32 %v2840_v22, %v969_v24  ;;  %v1275_v32 = vsel %vm1240_vm3, %v1270_v25, %v1274_v26  ;;  %v1212_v45 = vunpack.c.l.b16 %v1172_v35  ;;  %v1278_v59 = vor.u32 %v1276_v53, %v1274_v26  ;;  %v1042_v24 = vld [vmem:[%s3282_s4 + $0x98] sm:$0xff]  ;;  %v624_v35 = vpop.f32.mrf.mxu0 }
 0x132   : > { %1378 = vrot.lane.b32.xlu1 %v1359_v31, %s2587_s20  ;;  %1332 = vrot.lane.b32.xlu0 %v1275_v32, %s3288_s23 }
 0x133   : > { %v1013_v33 = vmax.f32 %v993_v30, 0.0  ;;  %v1524_v30 = vunpack.c.l.b16 %v2308_v29 }
 0x135   : > { %v1153_v37 = vmul.f32 %v1096_v34, %v1013_v33  ;;  %v1526_v31 = vpack.c.b16 %v1524_v30, %v1524_v30  ;;  %v2428_v33 = vld [vmem:[%s3283_s5 + $0xc] sm:$0xff] }
 0x136   : > { %v936_v39 = vpop.f32.mrf.mxu2 }
 0x137   : > { %v1173_v40 = vpack.c.bf16 %v1153_v37, %v1153_v37  ;;  %v970_v41 = vadd.f32 %v936_v39, %v767_v36  ;;  %v1554_v32 = vsel %vm1234_vm4, %v1526_v31, 0  ;;  %v771_v36 = vpop.f32.mrf.mxu1  ;;  %v2335_v37 = vld [vmem:[%s3283_s5 + $0x20] sm:$0xf] }
 0x138   : > { %1562 = vmatpush.bf16.msra.mxu3 %v1554_v32  ;;  %v1694_v39 = vunpack.c.l.b16 %v2335_v37  ;;  %v772_v53 = vadd.f32 %v771_v36, %v624_v35 }
 0x139   : > { %v1213_v46 = vunpack.c.l.b16 %v1173_v40  ;;  %v994_v47 = vadd.f32 %v2840_v22, %v970_v41 }
 0x13a   : > { %1125 = vperm.xlu0 %2501, %v1039_v42   ;;  %v1696_v40 = vpack.c.b16 %v1694_v39, %v1694_v39  ;;  %v627_v42 = vpop.f32.mrf.mxu0 }
 0x13b   : > { %v2901_v48 = vpack.c.b16 %v1213_v46, %v1212_v45  ;;  %v1014_v51 = vmax.f32 %v994_v47, 0.0  ;;  %v2429_v46 = vld [vmem:[%s3283_s5 + $0x18] sm:$0xff] }
 0x13c   : > { %1563 = vmatpush.bf16.msra.mxu3 %v2428_v33  ;;  %v1702_v44 = vsel %vm1234_vm4, %v1696_v40, 0 }
 0x13d   : > { %v1360_v52 = vrot.slane %v2901_v48, 1  ;;  %v1280_v54 = vshll.u32 %v2901_v48, 16  ;;  %v1154_v0 = vmul.f32 %v1101_v63, %v1014_v51  ;;  %v1284_v20 = vshrl.u32 %v2901_v48, 16  ;;  %1710 = vmatpush.bf16.msrb.mxu0 %v1702_v44 }
 0x13e   : > { %v939_v55 = vpop.f32.mrf.mxu2 }
 0x13f   : > { %v971_v56 = vadd.f32 %v939_v55, %v770_v49  ;;  %v1361_v57 = vsel %vm1350_vm2, %v1358_v18, %v1360_v52  ;;  %v1282_v61 = vrot.slane %v1280_v54, 1  ;;  %v1174_v11 = vpack.c.bf16 %v1154_v0, %v1154_v0  ;;  %v774_v43 = vpop.f32.mrf.mxu1 }
 0x140   : > { %1380 = vrot.lane.b32.xlu2 %v1361_v57, %s2587_s20  ;;  %v775_v45 = vadd.f32 %v774_v43, %v627_v42 }
 0x141   : > { %v995_v1 = vadd.f32 %v2840_v22, %v971_v56  ;;  %v1283_v2 = vsel %vm1240_vm3, %v1278_v59, %v1282_v61  ;;  %v1214_v16 = vunpack.c.l.b16 %v1174_v11  ;;  %v1286_v25 = vor.u32 %v1284_v20, %v1282_v61  ;;  %1711 = vmatpush.bf16.msrb.mxu0 %v2429_v46 }
 0x142   : > { %1334 = vrot.lane.b32.xlu1 %v1283_v2, %s3288_s23  ;;  %1130 = vperm.xlu0 %2501, %v1040_v62   ;;  %v629_v63 = vpop.f32.mrf.mxu0 }
 0x143   : > { %v1015_v4 = vmax.f32 %v995_v1, 0.0 }
 0x145   : > { %v1155_v12 = vmul.f32 %v1106_v6, %v1015_v4 }
 0x146   : > { %v941_v34 = vpop.f32.mrf.mxu2 }
 0x147   : > { %v1175_v13 = vpack.c.bf16 %v1155_v12, %v1155_v12  ;;  %v972_v57 = vadd.f32 %v941_v34, %v772_v53  ;;  %v776_v4 = vpop.f32.mrf.mxu1 }
 0x149   : > { %v1215_v17 = vunpack.c.l.b16 %v1175_v13  ;;  %v996_v12 = vadd.f32 %v2840_v22, %v972_v57 }
 0x14a   : > { %1135 = vperm.xlu1 %2502, %v1041_v14  }
 0x14b   : > { %v2917_v18 = vpack.c.b16 %v1215_v17, %v1214_v16 }
 0x14d   : > { %v1362_v19 = vrot.slane %v2917_v18, 1  ;;  %v1288_v21 = vshll.u32 %v2917_v18, 16  ;;  %v1292_v44 = vshrl.u32 %v2917_v18, 16 }
 0x14e   : > { %v944_v41 = vpop.f32.mrf.mxu2 }
 0x14f   : > { %v1363_v23 = vsel %vm1350_vm2, %v1360_v52, %v1362_v19  ;;  %v2928_v26 = vrot.slane %v1288_v21, 1  ;;  %v973_v51 = vadd.f32 %v944_v41, %v775_v45  ;;  %v777_v21 = vadd.f32 %v776_v4, %v629_v63 }
 0x150   : > { %1382 = vrot.lane.b32.xlu0 %v1363_v23, %s2587_s20 }
 0x151   : > { %v1291_v27 = vsel %vm1240_vm3, %v1286_v25, %v2928_v26  ;;  %v997_v56 = vadd.f32 %v2840_v22, %v973_v51  ;;  %v1294_v53 = vor.u32 %v1292_v44, %v2928_v26 }
 0x152   : > { %1140 = vperm.xlu1 %2502, %v1042_v24   ;;  %1336 = vrot.lane.b32.xlu2 %v1291_v27, %s3288_s23  ;;  %v1016_v27 = vmax.f32 %v996_v12, 0.0 }
 0x153   : > { %v1017_v0 = vmax.f32 %v997_v56, 0.0 }
 0x156   : > { %v946_v54 = vpop.f32.mrf.mxu2 }
 0x157   : > { %v974_v30 = vadd.f32 %v946_v54, %v777_v21 }
 0x159   : > { %v998_v36 = vadd.f32 %v2840_v22, %v974_v30 }
 0x15a   : > { %1045 = vperm.xlu1 %2502, %v1023_v28  }
 0x15b   : > { %v1018_v45 = vmax.f32 %v998_v36, 0.0 }
 0x15e   : > { %v949_v20 = vpop.f32.mrf.mxu2 }
 0x15f   : > { %v975_v39 = vadd.f32 %v949_v20, %v2817_v58 }
 0x161   : > { %v999_v51 = vadd.f32 %v2840_v22, %v975_v39 }
 0x163   : > { %v1019_v63 = vmax.f32 %v999_v51, 0.0 }
 0x166   : > { %v951_v40 = vpop.f32.mrf.mxu2 }
 0x16a   : > { %v1375_v49 = vpop.permute.xlu2 %1374 }
 0x172   : > { %v1116_v6 = vpop.permute.xlu2 %1115 }
 0x173   : > { %v1157_v23 = vmul.f32 %v1116_v6, %v1017_v0  ;;  %v954_v6 = vpop.f32.mrf.mxu2 }
 0x175   : > { %v1177_v31 = vpack.c.bf16 %v1157_v23, %v1157_v23 }
 0x177   : > { %v1217_v35 = vunpack.c.l.b16 %v1177_v31 }
 0x184   : > { %v1329_v47 = vpop.permute.xlu0 %1328 }
 0x185   : > { %v1398_v52 = vsel %vm1394_vm5, %v2846_v50, %v1329_v47 }
 0x186   : > { %v1421_v55 = vsel %vm1417_vm6, %v1398_v52, %v1375_v49  ;;  %v1121_v52 = vpop.permute.xlu2 %1120 }
 0x187   : > { %v1448_v59 = vshrl.u32 %v1421_v55, 16  ;;  %v1451_v61 = vshll.u32 %v1421_v55, 16 }
 0x189   : > { %v1450_v13 = vrot.slane %v1448_v59, 3  ;;  %v1453_v14 = vrot.slane %v1451_v61, 4 }
 0x18b   : > { %v2959_v28 = vor.u32 %v1453_v14, %v1450_v13 }
 0x192   : > { %v1377_v1 = vpop.permute.xlu0 %1376 }
 0x194   : > { %v1331_v62 = vpop.permute.xlu1 %1330 }
 0x195   : > { %v1400_v2 = vsel %vm1394_vm5, %v2850_v5, %v1331_v62 }
 0x196   : > { %v1423_v11 = vsel %vm1417_vm6, %v1400_v2, %v1377_v1 }
 0x197   : > { %v1455_v16 = vshrl.u32 %v1423_v11, 16  ;;  %v1458_v17 = vshll.u32 %v1423_v11, 16 }
 0x199   : > { %v1457_v24 = vrot.slane %v1455_v16, 3  ;;  %v1460_v25 = vrot.slane %v1458_v17, 4  ;;  %v977_v16 = vadd.f32 %v954_v6, %v2827_v3 }
 0x19a   : > { %v1381_v21 = vpop.permute.xlu2 %1380 }
 0x19b   : > { %v1461_v5 = vor.u32 %v1460_v25, %v1457_v24  ;;  %v1001_v30 = vadd.f32 %v2840_v22, %v977_v16 }
 0x19c   : > { %v1111_v29 = vpop.permute.xlu1 %1110 }
 0x19d   : > { %v1156_v32 = vmul.f32 %v1111_v29, %v1016_v27  ;;  %v2963_v33 = vsel %vm1447_vm7, %v2959_v28, %v1461_v5 }
 0x19e   : > { %2313 = vmatmul.msk.bf16.vlgmr.msra.gmra.mxu3 %vm1528_vm8, %v2963_v33 }
 0x19f   : > { %v1176_v34 = vpack.c.bf16 %v1156_v32, %v1156_v32 }
 0x1a1   : > { %v1216_v37 = vunpack.c.l.b16 %v1176_v34  ;;  %v956_v34 = vpop.f32.mrf.mxu2 }
 0x1a3   : > { %v2969_v41 = vpack.c.b16 %v1217_v35, %v1216_v37 }
 0x1a4   : > { %v1379_v42 = vpop.permute.xlu1 %1378  ;;  %v1333_v43 = vpop.permute.xlu0 %1332 }
 0x1a5   : > { %v1402_v46 = vsel %vm1394_vm5, %v2870_v38, %v1333_v43  ;;  %v1364_v47 = vrot.slane %v2969_v41, 1  ;;  %v1296_v49 = vshll.u32 %v2969_v41, 16  ;;  %v1158_v38 = vmul.f32 %v1121_v52, %v1018_v45 }
 0x1a6   : > { %v1425_v58 = vsel %vm1417_vm6, %v1402_v46, %v1379_v42  ;;  %v1300_v29 = vshrl.u32 %v2969_v41, 16  ;;  %v978_v42 = vadd.f32 %v956_v34, %v2829_v7  ;;  %v1021_v43 = vmax.f32 %v1001_v30, 0.0 }
 0x1a7   : > { %v1463_v54 = vshrl.u32 %v1425_v58, 16  ;;  %v1466_v55 = vshll.u32 %v1425_v58, 16  ;;  %v1365_v56 = vsel %vm1350_vm2, %v1362_v19, %v1364_v47  ;;  %v1298_v57 = vrot.slane %v1296_v49, 1 }
 0x1a8   : > { %1384 = vrot.lane.b32.xlu0 %v1365_v56, %s2587_s20  ;;  %v1178_v26 = vpack.c.bf16 %v1158_v38, %v1158_v38  ;;  %v976_v19 = vadd.f32 %v951_v40, %v2819_v60  ;;  %v1002_v51 = vadd.f32 %v2840_v22, %v978_v42 }
 0x1a9   : > { %v1465_v59 = vrot.slane %v1463_v54, 3  ;;  %v1468_v61 = vrot.slane %v1466_v55, 4  ;;  %v1299_v62 = vsel %vm1240_vm3, %v1294_v53, %v1298_v57 }
 0x1aa   : > { %1338 = vrot.lane.b32.xlu2 %v1299_v62, %s3288_s23  ;;  %v1218_v12 = vunpack.c.l.b16 %v1178_v26  ;;  %v1000_v14 = vadd.f32 %v2840_v22, %v976_v19  ;;  %v1022_v38 = vmax.f32 %v1002_v51, 0.0  ;;  %v1442_v19 = vld [vmem:[%s3283_s5 + $0x8] sm:$0xf] }
 0x1ab   : > { %v1469_v0 = vor.u32 %v1468_v61, %v1465_v59  ;;  %v983_v61 = vadd.f32 %v2840_v22, %v2833_v10  ;;  %v1805_v10 = vld [vmem:[%s3286_s8] sm:$0x3] }
 0x1ac   : > { %v1126_v1 = vpop.permute.xlu0 %1125  ;;  %v1020_v27 = vmax.f32 %v1000_v14, 0.0  ;;  %v1337_v52 = vpop.permute.xlu2 %1336  ;;  %v1873_v16 = vsel %vm1871_vm9, %v1805_v10, 0 }
 0x1ad   : > { %v1159_v2 = vmul.f32 %v1126_v1, %v1019_v63  ;;  %v2986_v4 = vsel %vm1447_vm7, %v1461_v5, %v1469_v0  ;;  %v1406_v54 = vsel %vm1394_vm5, %v2901_v48, %v1337_v52  ;;  %1882 = vmatpush.bf16.msrb.mxu1 %v1873_v16 }
 0x1ae   : > { %2314 = vmatmul.msk.bf16.gmra.mxu3 %vm1528_vm8, %v2986_v4  ;;  %2340 = vmatmul.msk.bf16.vlgmr.msrb.gmra.mxu0 %vm1528_vm8, %v2986_v4 }
 0x1af   : > { %v1179_v11 = vpack.c.bf16 %v1159_v2, %v1159_v2 }
 0x1b1   : > { %v1219_v13 = vunpack.c.l.b16 %v1179_v11 }
 0x1b3   : > { %v2995_v17 = vpack.c.b16 %v1219_v13, %v1218_v12  ;;  %v1618_v12 = vunpack.c.l.b16 %v1442_v19 }
 0x1b4   : > { %v1335_v20 = vpop.permute.xlu1 %1334  ;;  %v1131_v5 = vpop.permute.xlu0 %1130 }
 0x1b5   : > { %v1404_v60 = vsel %vm1394_vm5, %v2887_v15, %v1335_v20  ;;  %v1366_v23 = vrot.slane %v2995_v17, 1  ;;  %v1304_v24 = vshll.u32 %v2995_v17, 16  ;;  %v1302_v15 = vor.u32 %v1300_v29, %v1298_v57 }
 0x1b6   : > { %v1427_v25 = vsel %vm1417_vm6, %v1404_v60, %v1381_v21  ;;  %v1160_v39 = vmul.f32 %v1131_v5, %v1020_v27  ;;  %v1308_v59 = vshrl.u32 %v2995_v17, 16  ;;  %v1620_v20 = vpack.c.b16 %v1618_v12, %v1618_v12 }
 0x1b7   : > { %v1471_v3 = vshrl.u32 %v1427_v25, 16  ;;  %v1474_v31 = vshll.u32 %v1427_v25, 16  ;;  %v1367_v32 = vsel %vm1350_vm2, %v1364_v47, %v1366_v23  ;;  %v1306_v35 = vrot.slane %v1304_v24, 1 }
 0x1b8   : > { %1386 = vrot.lane.b32.xlu0 %v1367_v32, %s2587_s20  ;;  %v1180_v46 = vpack.c.bf16 %v1160_v39, %v1160_v39  ;;  %v1626_v25 = vsel %vm1234_vm4, %v1620_v20, 0  ;;  %v1003_v5 = vmax.f32 %v983_v61, 0.0 }
 0x1b9   : > { %v1473_v36 = vrot.slane %v1471_v3, 3  ;;  %v1476_v37 = vrot.slane %v1474_v31, 4  ;;  %v1307_v40 = vsel %vm1240_vm3, %v1302_v15, %v1306_v35  ;;  %v1310_v2 = vor.u32 %v1308_v59, %v1306_v35  ;;  %1634 = vmatpush.bf16.msrb.mxu3 %v1626_v25 }
 0x1ba   : > { %1340 = vrot.lane.b32.xlu2 %v1307_v40, %s3288_s23  ;;  %v1220_v58 = vunpack.c.l.b16 %v1180_v46 }
 0x1bb   : > { %v1477_v44 = vor.u32 %v1476_v37, %v1473_v36 }
 0x1bc   : > { %v1136_v45 = vpop.permute.xlu1 %1135 }
 0x1bd   : > { %v1161_v49 = vmul.f32 %v1136_v45, %v1021_v43  ;;  %v3010_v47 = vsel %vm1447_vm7, %v1469_v0, %v1477_v44 }
 0x1be   : > { %2315 = vmatmul.msk.bf16.gmra.mxu3 %vm1528_vm8, %v3010_v47  ;;  %2341 = vmatmul.msk.bf16.gmra.mxu0 %vm1528_vm8, %v3010_v47 }
 0x1bf   : > { %v1181_v7 = vpack.c.bf16 %v1161_v49, %v1161_v49 }
 0x1c1   : > { %v1221_v53 = vunpack.c.l.b16 %v1181_v7 }
 0x1c2   : > { %v1383_v55 = vpop.permute.xlu0 %1382 }
 0x1c3   : > { %v3019_v56 = vpack.c.b16 %v1221_v53, %v1220_v58  ;;  %v1429_v57 = vsel %vm1417_vm6, %v1406_v54, %v1383_v55  ;;  %v2427_v54 = vld [vmem:[%s3283_s5] sm:$0xff] }
 0x1c4   : > { %v1479_v62 = vshrl.u32 %v1429_v57, 16  ;;  %v1482_v63 = vshll.u32 %v1429_v57, 16  ;;  %v1141_v0 = vpop.permute.xlu1 %1140  ;;  %1635 = vmatpush.bf16.msrb.mxu3 %v2427_v54 }
 0x1c5   : > { %v1162_v1 = vmul.f32 %v1141_v0, %v1022_v38  ;;  %v1368_v26 = vrot.slane %v3019_v56, 1  ;;  %v1312_v48 = vshll.u32 %v3019_v56, 16  ;;  %v1316_v32 = vshrl.u32 %v3019_v56, 16 }
 0x1c6   : > { %v1481_v6 = vrot.slane %v1479_v62, 3  ;;  %v1484_v11 = vrot.slane %v1482_v63, 4 }
 0x1c7   : > { %v1182_v22 = vpack.c.bf16 %v1162_v1, %v1162_v1  ;;  %v1369_v13 = vsel %vm1350_vm2, %v1366_v23, %v1368_v26  ;;  %v1314_v14 = vrot.slane %v1312_v48, 1 }
 0x1c8   : > { %1388 = vrot.lane.b32.xlu2 %v1369_v13, %s2587_s20  ;;  %v1485_v21 = vor.u32 %v1484_v11, %v1481_v6 }
 0x1c9   : > { %v1222_v60 = vunpack.c.l.b16 %v1182_v22  ;;  %v1315_v24 = vsel %vm1240_vm3, %v1310_v2, %v1314_v14  ;;  %v1318_v36 = vor.u32 %v1316_v32, %v1314_v14 }
 0x1ca   : > { %1342 = vrot.lane.b32.xlu1 %v1315_v24, %s3288_s23  ;;  %v3042_v3 = vsel %vm1447_vm7, %v1477_v44, %v1485_v21 }
 0x1cb   : > { %v1233_v27 = vpack.c.b16 %v1222_v60, %v1222_v60 }
 0x1cc   : > { %v1046_v29 = vpop.permute.xlu1 %1045 }
 0x1cd   : > { %v3039_v23 = vsel %vm1234_vm4, %v1233_v27, 0  ;;  %v1143_v30 = vmul.f32 %v1046_v29, %v1003_v5 }
 0x1ce   : > { %2316 = vmatmul.msk.bf16.gmra.mxu3 %vm1528_vm8, %v3042_v3  ;;  %2342 = vmatmul.msk.bf16.gmra.mxu0 %vm1528_vm8, %v3042_v3  ;;  %v1370_v31 = vrot.slane %v3039_v23, 1  ;;  %v1319_v34 = vshll.u32 %v3039_v23, 16  ;;  %v1323_v45 = vshrl.u32 %v3039_v23, 16 }
 0x1cf   : > { %v1163_v15 = vpack.c.bf16 %v1143_v30, %v1143_v30 }
 0x1d0   : > { %v1371_v35 = vsel %vm1350_vm2, %v1368_v26, %v1370_v31  ;;  %v1321_v37 = vrot.slane %v1319_v34, 1 }
 0x1d1   : > { %v1203_v39 = vunpack.c.l.b16 %v1163_v15 }
 0x1d2   : > { %1390 = vrot.lane.b32.xlu1 %v1371_v35, %s2587_s20  ;;  %v1322_v40 = vsel %vm1240_vm3, %v1318_v36, %v1321_v37  ;;  %v1325_v51 = vor.u32 %v1323_v45, %v1321_v37 }
 0x1d3   : > { %v1223_v42 = vpack.c.b16 %v1203_v39, %v1203_v39  ;;  %1344 = vrot.lane.b32.xlu0 %v1322_v40, %s3288_s23 }
 0x1d5   : > { %v3056_v43 = vsel %vm1234_vm4, 0, %v1223_v42 }
 0x1d6   : > { %v1243_v44 = vshll.u32 %v3056_v43, 16  ;;  %v1351_v46 = vrot.slane %v3056_v43, 1  ;;  %v1241_v49 = vshrl.u32 %v3056_v43, 16 }
 0x1d8   : > { %v1245_v52 = vrot.slane %v1243_v44, 1  ;;  %v1353_v7 = vsel %vm1350_vm2, %v1351_v46, %v1352_v9 }
 0x1da   : > { %1346 = vrot.lane.b32.xlu1 %v1325_v51, %s3288_s23  ;;  %v1246_v58 = vor.u32 %v1245_v52, %v1241_v49 }
 0x1db   : > { %1372 = vrot.lane.b32.xlu0 %v1353_v7, %s2587_s20 }
 0x1dc   : > { %v1251_v53 = vsel %vm1240_vm3, %v1246_v58, %v2852_v8 }
 0x1dd   : > { %1326 = vrot.lane.b32.xlu2 %v1251_v53, %s3288_s23 }
 0x1e5   : > { %1392 = vrot.lane.b32.xlu2 %v1370_v31, %s2587_s20  ;;  %s2393_s20 = sshll.u32 %s2709_s16, 6  ;;  %s1989_s16 = sshll.u32 %s1986_s18, 4  ;;  %s1990_s16 = int_to_ptr.hbm [resolvable:$true] %s1989_s16 }
 0x1e6   : > { %s3101_s25 = scalar_lea.vmem %s3285_s7, %s2393_s20  ;;  %s2520_s26 = sshra.s32 %s1990_s16, 4  ;;  %s2521_s26 = int_to_ptr.hbm [resolvable:$true] %s2520_s26 }
 0x1e7   : > { %v2430_v5 = vld [vmem:[%s3101_s25] sm:$0xff]  ;;  %v2431_v46 = vld [vmem:[%s3101_s25 + $0x8] sm:$0xff]  ;;  %s2522_s28 = scalar_lea.hbm %s2521_s26, 128  ;;  %p2527_p1 = scmp.lt.s32.totalorder %s2521_s26, %s3287_s9 }
 0x1e8   : > { %2380 = vmatmul.msk.bf16.vlgmr.msrb.gmra.mxu1 %vm1846_vm10, %v2430_v5  ;;  %p2523_p12 = scmp.ne.s32.totalorder %s2521_s26, %s2522_s28  ;;  %p2528_p2 = scmp.lt.s32.totalorder %s2526_s24, %s2522_s28 }
 0x1ea   : > { %p2524_p13 = pnand %p2523_p12, %p2680_p4  ;;  %p2529_p3 = por %p2528_p2, %p2527_p1 }
 0x1ec   : > { %p2525_p0 = pneg %p2524_p13 }
 0x1ee   : > { %p2530_p5 = pnand %p2529_p3, %p2525_p0 }
 0x1f8   : > { %2381 = vmatmul.msk.bf16.gmra.mxu1 %vm1846_vm10, %v2431_v46 }
 0x204   : > { %v1339_v55 = vpop.permute.xlu2 %1338 }
 0x205   : > { %v1408_v50 = vsel %vm1394_vm5, %v2917_v18, %v1339_v55 }
 0x214   : > { %v1341_v0 = vpop.permute.xlu2 %1340 }
 0x215   : > { %v1410_v18 = vsel %vm1394_vm5, %v2969_v41, %v1341_v0  ;;  %v2434_v0 = vld [vmem:[%s3101_s25 + $0x20] sm:$0xff] }
 0x21a   : > { %v1385_v9 = vpop.permute.xlu0 %1384 }
 0x21b   : > { %v1431_v57 = vsel %vm1417_vm6, %v1408_v50, %v1385_v9 }
 0x21c   : > { %v1487_v38 = vshrl.u32 %v1431_v57, 16  ;;  %v1490_v59 = vshll.u32 %v1431_v57, 16 }
 0x21e   : > { %v1489_v61 = vrot.slane %v1487_v38, 3  ;;  %v1492_v8 = vrot.slane %v1490_v59, 4  ;;  %v2432_v59 = vld [vmem:[%s3101_s25 + $0x10] sm:$0xff] }
 0x21f   : > { %2382 = vmatmul.msk.bf16.gmra.mxu1 %vm1846_vm10, %v2432_v59 }
 0x220   : > { %v1493_v62 = vor.u32 %v1492_v8, %v1489_v61 }
 0x221   : > { %v1565_v49 = vpop.f32.mrf.mxu3 }
 0x222   : > { %v3078_v63 = vsel %vm1447_vm7, %v1485_v21, %v1493_v62  ;;  %v1389_v41 = vpop.permute.xlu2 %1388 }
 0x223   : > { %2317 = vmatmul.msk.bf16.gmra.mxu3 %vm1528_vm8, %v3078_v63  ;;  %2343 = vmatmul.msk.bf16.gmra.mxu0 %vm1528_vm8, %v3078_v63 }
 0x229   : > { %v1567_v9 = vpop.f32.mrf.mxu3 }
 0x22a   : > { %v1387_v1 = vpop.permute.xlu0 %1386 }
 0x22b   : > { %v1433_v26 = vsel %vm1417_vm6, %v1410_v18, %v1387_v1 }
 0x22c   : > { %v1495_v2 = vshrl.u32 %v1433_v26, 16  ;;  %v1498_v48 = vshll.u32 %v1433_v26, 16 }
 0x22e   : > { %v1497_v19 = vrot.slane %v1495_v2, 3  ;;  %v1500_v6 = vrot.slane %v1498_v48, 4 }
 0x230   : > { %v1501_v11 = vor.u32 %v1500_v6, %v1497_v19 }
 0x231   : > { %v1570_v61 = vpop.f32.mrf.mxu3 }
 0x232   : > { %v3088_v12 = vsel %vm1447_vm7, %v1493_v62, %v1501_v11  ;;  %v2433_v62 = vld [vmem:[%s3101_s25 + $0x18] sm:$0xff] }
 0x233   : > { %2318 = vmatmul.msk.bf16.gmra.mxu3 %vm1528_vm8, %v3088_v12  ;;  %2344 = vmatmul.msk.bf16.gmra.mxu0 %vm1528_vm8, %v3088_v12 }
 0x234   : > { %2383 = vmatmul.msk.bf16.gmra.mxu1 %vm1846_vm10, %v2433_v62 }
 0x237   : > { %v1327_v32 = vpop.permute.xlu2 %1326 }
 0x238   : > { %v1396_v39 = vsel %vm1394_vm5, %v3056_v43, %v1327_v32 }
 0x239   : > { %v3133_v8 = vpop.f32.mrf.mxu3 }
 0x23c   : > { %v1343_v10 = vpop.permute.xlu1 %1342 }
 0x23d   : > { %v1412_v22 = vsel %vm1394_vm5, %v2995_v17, %v1343_v10 }
 0x23e   : > { %v1435_v13 = vsel %vm1417_vm6, %v1412_v22, %v1389_v41 }
 0x23f   : > { %v1503_v14 = vshrl.u32 %v1435_v13, 16  ;;  %v1506_v16 = vshll.u32 %v1435_v13, 16  ;;  %v1393_v40 = vpop.permute.xlu2 %1392 }
 0x241   : > { %v1505_v20 = vrot.slane %v1503_v14, 3  ;;  %v1508_v21 = vrot.slane %v1506_v16, 4 }
 0x243   : > { %v1509_v60 = vor.u32 %v1508_v21, %v1505_v20 }
 0x244   : > { %v1391_v27 = vpop.permute.xlu1 %1390  ;;  %2384 = vmatmul.msk.bf16.gmra.mxu1 %vm1846_vm10, %v2434_v0 }
 0x245   : > { %v1345_v24 = vpop.permute.xlu0 %1344  ;;  %v3104_v25 = vsel %vm1447_vm7, %v1501_v11, %v1509_v60  ;;  %v1713_v11 = vpop.f32.mrf.mxu0 }
 0x246   : > { %v1414_v17 = vsel %vm1394_vm5, %v3019_v56, %v1345_v24  ;;  %2319 = vmatmul.msk.bf16.gmra.mxu3 %vm1528_vm8, %v3104_v25  ;;  %2345 = vmatmul.msk.bf16.gmra.mxu0 %vm1528_vm8, %v3104_v25 }
 0x247   : > { %v1437_v29 = vsel %vm1417_vm6, %v1414_v17, %v1391_v27 }
 0x248   : > { %v1511_v30 = vshrl.u32 %v1437_v29, 16  ;;  %v1514_v31 = vshll.u32 %v1437_v29, 16 }
 0x24a   : > { %v1513_v34 = vrot.slane %v1511_v30, 3  ;;  %v1516_v15 = vrot.slane %v1514_v31, 4 }
 0x24c   : > { %v1347_v35 = vpop.permute.xlu1 %1346  ;;  %v1517_v56 = vor.u32 %v1516_v15, %v1513_v34 }
 0x24d   : > { %v1416_v36 = vsel %vm1394_vm5, %v3039_v23, %v1347_v35  ;;  %v1373_v37 = vpop.permute.xlu0 %1372  ;;  %v1715_v22 = vpop.f32.mrf.mxu0 }
 0x24e   : > { %v1518_v42 = vsel %vm1447_vm7, %v1509_v60, %v1517_v56  ;;  %v1439_v44 = vsel %vm1417_vm6, %v1416_v36, %v1393_v40  ;;  %v1419_v45 = vsel %vm1417_vm6, %v1396_v39, %v1373_v37  ;;  %v3186_v60 = vld [vmem:[%s3284_s6] ss:$0 sm:$0xff] }
 0x24f   : > { %v1681_v23 = vshrl.u32 %v1439_v44, 16  ;;  %v1684_v51 = vshll.u32 %v1439_v44, 16  ;;  %v1605_v52 = vshrl.u32 %v1419_v45, 16  ;;  %v1608_v43 = vshll.u32 %v1419_v45, 16 }
 0x251   : > { %v1683_v7 = vrot.slane %v1681_v23, 3  ;;  %v1686_v58 = vrot.slane %v1684_v51, 4  ;;  %v1607_v53 = vrot.slane %v1605_v52, 3  ;;  %v1610_v54 = vrot.slane %v1608_v43, 4 }
 0x253   : > { %v1687_v55 = vor.u32 %v1686_v58, %v1683_v7  ;;  %v1611_v50 = vor.u32 %v1610_v54, %v1607_v53 }
 0x255   : > { %v1612_v57 = vsel %vm1447_vm7, %v1611_v50, %v2959_v28  ;;  %v1688_v38 = vsel %vm1447_vm7, %v1517_v56, %v1687_v55  ;;  %v3139_v28 = vpop.f32.mrf.mxu3  ;;  %v1718_v16 = vpop.f32.mrf.mxu0 }
 0x256   : > { %2320 = vmatmul.msk.bf16.gmra.mxu3 %vm1528_vm8, %v1518_v42  ;;  %2346 = vmatmul.msk.bf16.gmra.mxu0 %vm1528_vm8, %v1518_v42 }
 0x25d   : > { %v3144_v18 = vpop.f32.mrf.mxu3  ;;  %v1720_v27 = vpop.f32.mrf.mxu0 }
 0x265   : > { %v3147_v1 = vpop.f32.mrf.mxu3  ;;  %v1884_v41 = vpop.f32.mrf.mxu1 }
 0x266   : > { %2325 = vmatmul.msk.bf16.vlgmr.msrb.gmra.mxu3 %vm1528_vm8, %v1612_v57  ;;  %2347 = vmatmul.msk.bf16.gmra.mxu0 %vm1528_vm8, %v1688_v38  ;;  %v1723_v15 = vpop.f32.mrf.mxu0 }
 0x26d   : > { %v3153_v26 = vpop.f32.mrf.mxu3  ;;  %v1886_v13 = vpop.f32.mrf.mxu1 }
 0x26e   : > { %v1725_v23 = vpop.f32.mrf.mxu0 }
 0x275   : > { %v1889_v20 = vpop.f32.mrf.mxu1 }
 0x276   : > { %2326 = vmatmul.msk.bf16.gmra.mxu3 %vm1528_vm8, %v2963_v33  ;;  %v2435_v33 = vld [vmem:[%s3101_s25 + $0x28] sm:$0xff] }
 0x277   : > { %2385 = vmatmul.msk.bf16.gmra.mxu1 %vm1846_vm10, %v2435_v33 }
 0x27d   : > { %v1891_v17 = vpop.f32.mrf.mxu1 }
 0x286   : > { %2327 = vmatmul.msk.bf16.gmra.mxu3 %vm1528_vm8, %v2986_v4  ;;  %v2436_v4 = vld [vmem:[%s3101_s25 + $0x30] sm:$0xff] }
 0x287   : > { %2386 = vmatmul.msk.bf16.gmra.mxu1 %vm1846_vm10, %v2436_v4 }
 0x296   : > { %2328 = vmatmul.msk.bf16.gmra.mxu3 %vm1528_vm8, %v3010_v47  ;;  %v2437_v47 = vld [vmem:[%s3101_s25 + $0x38] sm:$0xff]  ;;  %s1987_s25 = sshll.u32 %s3192_s29, 4  ;;  %s1988_s25 = int_to_ptr.vmem [resolvable:$true] %s1987_s25 }
 0x297   : > { %2387 = vmatmul.msk.bf16.gmra.mxu1 %vm1846_vm10, %v2437_v47 }
 0x29c   : > { %v1894_v36 = vpop.f32.mrf.mxu1 }
 0x2a0   : > { %v1728_v55 = vpop.f32.mrf.mxu0 }
 0x2a4   : > { %v1896_v51 = vpop.f32.mrf.mxu1 }
 0x2a6   : > { %v3155_v2 = vpop.f32.mrf.mxu3  ;;  %2329 = vmatmul.msk.bf16.gmra.mxu3 %vm1528_vm8, %v3042_v3 }
 0x2a8   : > { %v1730_v0 = vpop.f32.mrf.mxu0 }
 0x2ae   : > { %v3161_v48 = vpop.f32.mrf.mxu3 }
 0x2b6   : > { %2330 = vmatmul.msk.bf16.gmra.mxu3 %vm1528_vm8, %v3078_v63  ;;  %v3165_v19 = vpop.f32.mrf.mxu3 }
 0x2be   : > { %v3169_v6 = vpop.f32.mrf.mxu3 }
 0x2c6   : > { %2331 = vmatmul.msk.bf16.gmra.mxu3 %vm1528_vm8, %v3088_v12 }
 0x2c9   : > { %v3173_v3 = vpop.f32.mrf.mxu3 }
 0x2d1   : > { %v3175_v10 = vpop.f32.mrf.mxu3 }
 0x2d6   : > { %2332 = vmatmul.msk.bf16.gmra.mxu3 %vm1528_vm8, %v3104_v25 }
 0x2d9   : > { %v3179_v63 = vpop.f32.mrf.mxu3 }
 0x2e1   : > { %v3181_v14 = vpop.f32.mrf.mxu3 }
 0x2e9   : > { %v1637_v21 = vpop.f32.mrf.mxu3 }
 0x2ea   : > { %v1638_v12 = vadd.f32 %v1637_v21, %v1565_v49 }
 0x2ec   : > { %v1753_v24 = vadd.f32 %v1713_v11, %v1638_v12 }
 0x2ee   : > { %v1773_v25 = vadd.f32 %v3186_v60, %v1753_v24 }
 0x2f0   : > { %v1924_v5 = vadd.f32 %v1884_v41, %v1773_v25 }
 0x2f1   : > { %v1639_v29 = vpop.f32.mrf.mxu3 }
 0x2f2   : > { %v1940_v30 = vmax.f32 %v1924_v5, 0.0  ;;  %v1640_v31 = vadd.f32 %v1639_v29, %v1567_v9  ;;  %v1899_v9 = vpop.f32.mrf.mxu1 }
 0x2f4   : > { %1956 = vst [vmem:[%s3192_s29] sm:$0xff] %v1940_v30  ;;  %v1754_v32 = vadd.f32 %v1715_v22, %v1640_v31 }
 0x2f6   : > { %v1774_v34 = vadd.f32 %v3186_v60, %v1754_v32 }
 0x2f8   : > { %v1925_v35 = vadd.f32 %v1886_v13, %v1774_v34 }
 0x2f9   : > { %v1642_v56 = vpop.f32.mrf.mxu3 }
 0x2fa   : > { %v1941_v37 = vmax.f32 %v1925_v35, 0.0  ;;  %v1643_v39 = vadd.f32 %v1642_v56, %v1570_v61  ;;  %v1901_v4 = vpop.f32.mrf.mxu1 }
 0x2fc   : > { %1957 = vst [vmem:[%s3192_s29 + $0x8] sm:$0xff] %v1941_v37  ;;  %v1755_v40 = vadd.f32 %v1718_v16, %v1643_v39  ;;  %v1733_v16 = vpop.f32.mrf.mxu0 }
 0x2fe   : > { %v1775_v42 = vadd.f32 %v3186_v60, %v1755_v40 }
 0x300   : > { %v1926_v44 = vadd.f32 %v1889_v20, %v1775_v42 }
 0x301   : > { %v1644_v45 = vpop.f32.mrf.mxu3 }
 0x302   : > { %v1942_v46 = vmax.f32 %v1926_v44, 0.0  ;;  %v1645_v49 = vadd.f32 %v1644_v45, %v3133_v8  ;;  %v1904_v21 = vpop.f32.mrf.mxu1 }
 0x304   : > { %1958 = vst [vmem:[%s3192_s29 + $0x10] sm:$0xff] %v1942_v46  ;;  %v1756_v52 = vadd.f32 %v1720_v27, %v1645_v49  ;;  %v1735_v5 = vpop.f32.mrf.mxu0 }
 0x306   : > { %v1776_v43 = vadd.f32 %v3186_v60, %v1756_v52 }
 0x308   : > { %v1927_v7 = vadd.f32 %v1891_v17, %v1776_v43 }
 0x309   : > { %v1647_v58 = vpop.f32.mrf.mxu3 }
 0x30a   : > { %v1943_v53 = vmax.f32 %v1927_v7, 0.0  ;;  %v1648_v54 = vadd.f32 %v1647_v58, %v3139_v28  ;;  %v1906_v31 = vpop.f32.mrf.mxu1 }
 0x30c   : > { %1959 = vst [vmem:[%s3192_s29 + $0x18] sm:$0xff] %v1943_v53  ;;  %v1757_v50 = vadd.f32 %v1723_v15, %v1648_v54  ;;  %v1738_v35 = vpop.f32.mrf.mxu0 }
 0x30e   : > { %v1777_v57 = vadd.f32 %v3186_v60, %v1757_v50 }
 0x310   : > { %v1928_v38 = vadd.f32 %v1894_v36, %v1777_v57 }
 0x311   : > { %v1649_v59 = vpop.f32.mrf.mxu3 }
 0x312   : > { %v1944_v61 = vmax.f32 %v1928_v38, 0.0  ;;  %v1650_v8 = vadd.f32 %v1649_v59, %v3144_v18  ;;  %v1909_v39 = vpop.f32.mrf.mxu1 }
 0x314   : > { %1960 = vst [vmem:[%s3192_s29 + $0x20] sm:$0xff] %v1944_v61  ;;  %v1758_v62 = vadd.f32 %v1725_v23, %v1650_v8  ;;  %v1740_v46 = vpop.f32.mrf.mxu0 }
 0x316   : > { %v1778_v33 = vadd.f32 %v3186_v60, %v1758_v62 }
 0x318   : > { %v1929_v28 = vadd.f32 %v1896_v51, %v1778_v33 }
 0x319   : > { %v1652_v47 = vpop.f32.mrf.mxu3 }
 0x31a   : > { %v1945_v11 = vmax.f32 %v1929_v28, 0.0  ;;  %v1653_v41 = vadd.f32 %v1652_v47, %v3147_v1  ;;  %v1911_v51 = vpop.f32.mrf.mxu1 }
 0x31c   : > { %1961 = vst [vmem:[%s3192_s29 + $0x28] sm:$0xff] %v1945_v11  ;;  %v1759_v22 = vadd.f32 %v1728_v55, %v1653_v41  ;;  %v1743_v53 = vpop.f32.mrf.mxu0 }
 0x31e   : > { %v1779_v13 = vadd.f32 %v3186_v60, %v1759_v22 }
 0x320   : > { %v1930_v20 = vadd.f32 %v1899_v9, %v1779_v13 }
 0x321   : > { %v1654_v18 = vpop.f32.mrf.mxu3 }
 0x322   : > { %v1946_v12 = vmax.f32 %v1930_v20, 0.0  ;;  %v1655_v24 = vadd.f32 %v1654_v18, %v3153_v26 }
 0x324   : > { %1962 = vst [vmem:[%s3192_s29 + $0x30] sm:$0xff] %v1946_v12  ;;  %v1760_v27 = vadd.f32 %v1730_v0, %v1655_v24  ;;  %v1745_v61 = vpop.f32.mrf.mxu0 }
 0x326   : > { %v1780_v25 = vadd.f32 %v3186_v60, %v1760_v27 }
 0x328   : > { %v1931_v17 = vadd.f32 %v1901_v4, %v1780_v25 }
 0x329   : > { %v1657_v1 = vpop.f32.mrf.mxu3 }
 0x32a   : > { %v1947_v29 = vmax.f32 %v1931_v17, 0.0  ;;  %v1658_v30 = vadd.f32 %v1657_v1, %v3155_v2 }
 0x32c   : > { %1963 = vst [vmem:[%s3192_s29 + $0x38] sm:$0xff] %v1947_v29  ;;  %v1761_v32 = vadd.f32 %v1733_v16, %v1658_v30 }
 0x32e   : > { %v1781_v34 = vadd.f32 %v3186_v60, %v1761_v32 }
 0x330   : > { %v1932_v15 = vadd.f32 %v1904_v21, %v1781_v34 }
 0x331   : > { %v1659_v26 = vpop.f32.mrf.mxu3 }
 0x332   : > { %v1948_v56 = vmax.f32 %v1932_v15, 0.0  ;;  %v1660_v36 = vadd.f32 %v1659_v26, %v3161_v48 }
 0x334   : > { %1964 = vst [vmem:[%s3192_s29 + $0x40] sm:$0xff] %v1948_v56  ;;  %v1762_v37 = vadd.f32 %v1735_v5, %v1660_v36 }
 0x336   : > { %v1782_v40 = vadd.f32 %v3186_v60, %v1762_v37 }
 0x338   : > { %v1933_v42 = vadd.f32 %v1906_v31, %v1782_v40 }
 0x339   : > { %v1662_v2 = vpop.f32.mrf.mxu3 }
 0x33a   : > { %v1949_v44 = vmax.f32 %v1933_v42, 0.0  ;;  %v1663_v45 = vadd.f32 %v1662_v2, %v3165_v19  ;;  %v1914_v19 = vpop.f32.mrf.mxu1 }
 0x33c   : > { %1965 = vst [vmem:[%s3192_s29 + $0x48] sm:$0xff] %v1949_v44  ;;  %v1763_v49 = vadd.f32 %v1738_v35, %v1663_v45 }
 0x33e   : > { %v1783_v23 = vadd.f32 %v3186_v60, %v1763_v49 }
 0x340   : > { %v1934_v52 = vadd.f32 %v1909_v39, %v1783_v23 }
 0x341   : > { %v1664_v48 = vpop.f32.mrf.mxu3 }
 0x342   : > { %v1950_v43 = vmax.f32 %v1934_v52, 0.0  ;;  %v1665_v7 = vadd.f32 %v1664_v48, %v3169_v6  ;;  %v1916_v33 = vpop.f32.mrf.mxu1 }
 0x344   : > { %1966 = vst [vmem:[%s3192_s29 + $0x50] sm:$0xff] %v1950_v43  ;;  %v1764_v58 = vadd.f32 %v1740_v46, %v1665_v7 }
 0x346   : > { %v1784_v54 = vadd.f32 %v3186_v60, %v1764_v58 }
 0x348   : > { %v1935_v55 = vadd.f32 %v1911_v51, %v1784_v54 }
 0x349   : > { %v1667_v50 = vpop.f32.mrf.mxu3 }
 0x34a   : > { %v1951_v9 = vmax.f32 %v1935_v55, 0.0  ;;  %v1668_v57 = vadd.f32 %v1667_v50, %v3173_v3  ;;  %v1748_v3 = vpop.f32.mrf.mxu0  ;;  %v1919_v16 = vpop.f32.mrf.mxu1 }
 0x34c   : > { %1967 = vst [vmem:[%s3192_s29 + $0x58] sm:$0xff] %v1951_v9  ;;  %v1765_v38 = vadd.f32 %v1743_v53, %v1668_v57 }
 0x34e   : > { %v1785_v59 = vadd.f32 %v3186_v60, %v1765_v38 }
 0x350   : > { %v1936_v8 = vadd.f32 %v1914_v19, %v1785_v59 }
 0x351   : > { %v1669_v6 = vpop.f32.mrf.mxu3 }
 0x352   : > { %v1952_v62 = vmax.f32 %v1936_v8, 0.0  ;;  %v1670_v0 = vadd.f32 %v1669_v6, %v3175_v10  ;;  %v1750_v24 = vpop.f32.mrf.mxu0  ;;  %v1921_v25 = vpop.f32.mrf.mxu1 }
 0x354   : > { %1968 = vst [vmem:[%s3192_s29 + $0x60] sm:$0xff] %v1952_v62  ;;  %v1766_v4 = vadd.f32 %v1745_v61, %v1670_v0 }
 0x356   : > { %v1786_v28 = vadd.f32 %v3186_v60, %v1766_v4 }
 0x358   : > { %v1937_v47 = vadd.f32 %v1916_v33, %v1786_v28 }
 0x359   : > { %v1672_v11 = vpop.f32.mrf.mxu3 }
 0x35a   : > { %v1953_v41 = vmax.f32 %v1937_v47, 0.0  ;;  %v1673_v22 = vadd.f32 %v1672_v11, %v3179_v63 }
 0x35c   : > { %1969 = vst [vmem:[%s3192_s29 + $0x68] sm:$0xff] %v1953_v41  ;;  %v1767_v13 = vadd.f32 %v1748_v3, %v1673_v22 }
 0x35e   : > { %v1787_v20 = vadd.f32 %v3186_v60, %v1767_v13 }
 0x360   : > { %v1938_v10 = vadd.f32 %v1919_v16, %v1787_v20 }
 0x361   : > { %v1674_v18 = vpop.f32.mrf.mxu3 }
 0x362   : > { %v1954_v21 = vmax.f32 %v1938_v10, 0.0  ;;  %v1675_v12 = vadd.f32 %v1674_v18, %v3181_v14 }
 0x364   : > { %1970 = vst [vmem:[%s3192_s29 + $0x70] sm:$0xff] %v1954_v21  ;;  %v1768_v27 = vadd.f32 %v1750_v24, %v1675_v12 }
 0x366   : > { %v1788_v63 = vadd.f32 %v3186_v60, %v1768_v27 }
 0x368   : > { %v1939_v17 = vadd.f32 %v1921_v25, %v1788_v63 }
 0x36a   : > { %v1955_v5 = vmax.f32 %v1939_v17, 0.0 }
 0x36c   : > { %1971 = vst [vmem:[%s3192_s29 + $0x78] sm:$0xff] %v1955_v5 }
 0x36d   : > { %2533 = shalt.err (!%p2530_p5)
}
 0x36e   : > { %s2589_s27 = smov 128   ;;  %s3291_s29 = smov 8  }
 0x36f   : > { %2442 = dma.vmem_to_hbm [thread:$0]  (%p2680_p4), %s1988_s25, 2048, %s1990_s16, %s1973_s12, %s2589_s27, %s2589_s27, %s3291_s29  }
 0x370 PF: > { %p2448_p6 = scmp.ge.s32.totalorder %s2584_s14, 2  ;;  %s2004_s15 = sand.u32 1, %s2564_s30  }
 0x371   : > { %s2005_s23 = scalar_lea.sflag [#allocation3], %s2004_s15 }
 0x372   : > { %p2445_p7 = pnand %p2448_p6, %p2687_p8 }
 0x374   : > { %p2446_p9 = pneg %p2445_p7 }
 0x376   : > { %2559 = dma.done.wait (%p2446_p9), %s2005_s23, 2048  }
 0x377   : > { %2561 = vsyncadd (%p2446_p9), %s2005_s23, 4294965248  ;;  %s22_s14 = sadd.s32 1, %s2584_s14   ;;  %s3292_s30 = smov %s2568_s10 }
 0x378   : > { %p19_p10 = scmp.ge.s32.totalorder %s22_s14, 4   ;;  %s3293_s10 = smov %s2572_s11 }
 0x379   : > { %s3294_s11 = smov %s2693_s22  ;;  %s3295_s12 = smov %s2580_s13 }
 0x37a   : > { %s3296_s13 = smov %s3298_s17  ;;  %21 = sbr.rel (!%p19_p10) target bundleno = 4 (0x4), region = 104 }
 0x37f   :  { %2011 = vsyncpa [#allocation3], 1 }
 0x380   :  { %2013 = vsyncpa [#allocation3 + $0x1], 1 }

</bundles_post_ra>
